<compile_context>
chip_gen: v5e
topology: v5e:2x2
jax: 0.10.0
libtpu: 0.0.40
codegen_flags: <defaults>
</compile_context>

<pallas_src>
import numpy as np
import jax
import jax.numpy as jnp
from jax import lax
from jax.experimental import pallas as pl
from jax.experimental.pallas import tpu as pltpu

N_QUBITS = 9
N_LAYERS = 3
DIM = 2 ** N_QUBITS  # 512


# ----------------- circuit-unitary construction (host glue, weights-only) -----------------
def _kron_list(ms):
    full = ms[0]
    for m in ms[1:]:
        full = np.kron(full, m)
    return full


def _rot_matrix(phi, theta, omega):
    # PennyLane Rot(phi, theta, omega) = RZ(omega) RY(theta) RZ(phi)
    c, s = np.cos(theta / 2.0), np.sin(theta / 2.0)
    return np.array(
        [[np.exp(-1j * (phi + omega) / 2) * c, -np.exp(1j * (phi - omega) / 2) * s],
         [np.exp(-1j * (phi - omega) / 2) * s, np.exp(1j * (phi + omega) / 2) * c]],
        dtype=np.complex128,
    )


def _expand_1q(gate, wire, n=N_QUBITS):
    mats = [np.eye(2, dtype=np.complex128)] * n
    mats[wire] = gate
    return _kron_list(mats)


def _expand_cnot(ctrl, tgt, n=N_QUBITS):
    I2 = np.eye(2, dtype=np.complex128)
    P0 = np.array([[1, 0], [0, 0]], dtype=np.complex128)
    P1 = np.array([[0, 0], [0, 1]], dtype=np.complex128)
    X = np.array([[0, 1], [1, 0]], dtype=np.complex128)
    m0 = [I2] * n
    m0[ctrl] = P0
    m1 = [I2] * n
    m1[ctrl] = P1
    m1[tgt] = X
    return _kron_list(m0) + _kron_list(m1)


def build_sel_unitary(weights):
    """Full 512x512 unitary of StronglyEntanglingLayers(weights) on 9 wires."""
    w = np.asarray(weights, dtype=np.float64)
    U = np.eye(DIM, dtype=np.complex128)
    n = N_QUBITS
    for l in range(w.shape[0]):
        for i in range(n):
            phi, theta, omega = w[l, i]
            U = _expand_1q(_rot_matrix(phi, theta, omega), i) @ U
        r = (l % (n - 1)) + 1  # PennyLane default ranges
        for i in range(n):
            U = _expand_cnot(i, (i + r) % n) @ U
    return U


def _zsign():
    idx = np.arange(DIM)
    return 1.0 - 2.0 * ((idx >> (N_QUBITS - 1)) & 1)  # +1 if MSB==0 else -1


# Cache the folded observable matrix (bf16 hi/lo split) per weights value, so
# unitary construction + splitting + H2D transfer happen once, not per forward.
_M_CACHE = {}


def _get_observable_matrices(weights):
    w = np.asarray(weights, dtype=np.float64)
    key = w.tobytes()
    cached = _M_CACHE.get(key)
    if cached is None:
        U = build_sel_unitary(w)
        z = _zsign()
        # U^H @ diag(z) @ U  (Hermitian); psi real => only the real part matters.
        M = ((U.conj().T * z) @ U).real
        m32 = jnp.asarray(M, dtype=jnp.float32)
        m_hi = m32.astype(jnp.bfloat16)
        m_lo = (m32 - m_hi.astype(jnp.float32)).astype(jnp.bfloat16)
        cached = (jax.device_put(m_hi), jax.device_put(m_lo))   # (512, 512) x2, bf16
        _M_CACHE[key] = cached
    return cached


# ----------------------------------- Pallas kernel -----------------------------------
def qnn_kernel(x_ref, mhi_ref, mlo_ref, out_ref):
    x = x_ref[...]                                        # (TB, 512) f32, zero-padded
    # AmplitudeEmbedding(normalize=True): per-row L2 normalization
    sq = jnp.sum(x * x, axis=-1, keepdims=True)           # (TB, 1)
    inv = jnp.where(sq > 0.0, lax.rsqrt(sq), 0.0)         # padded rows stay exactly 0
    psi = x * inv                                         # real-valued initial state, f32

    # 3-pass bf16 matmul (hi/lo split), f32 accumulation on the MXU:
    #   psi @ M  ~=  psi_hi @ M_hi + psi_hi @ M_lo + psi_lo @ M_hi
    psi_hi = psi.astype(jnp.bfloat16)
    psi_lo = (psi - psi_hi.astype(jnp.float32)).astype(jnp.bfloat16)
    m_hi = mhi_ref[...]
    m_lo = mlo_ref[...]
    y = jnp.dot(psi_hi, m_hi, preferred_element_type=jnp.float32)       # (TB, 512)
    y = y + jnp.dot(psi_hi, m_lo, preferred_element_type=jnp.float32)
    y = y + jnp.dot(psi_lo, m_hi, preferred_element_type=jnp.float32)

    # <Z_0> = psi^T M psi : VPU multiply + lane reduction (hidden under the MXU)
    out_ref[...] = jnp.sum(psi * y, axis=-1, keepdims=True)             # (TB, 1)


def _round_up(n, m):
    return ((n + m - 1) // m) * m


def _choose_batch_tile(B):
    if B <= 256:
        # small batch: one tile, pad only to the f32 sublane granularity (8)
        return max(8, _round_up(B, 8))
    # large batch: big tiles amortize per-grid-step overhead, but keep >= 2
    # grid steps so both v7x TensorCores are used by the "parallel" axis.
    half = (B + 1) // 2
    return min(2048, _round_up(half, 256))


def quantum_nn_forward(x, weights):
    x = jnp.asarray(x, dtype=jnp.float32)
    if x.ndim == 1:
        x = x[None, :]
    B, F = x.shape

    # truncate features to 512 (zero-padding of features is fused below)
    if F > DIM:
        x = x[:, :DIM]
        F = DIM

    TB = _choose_batch_tile(B)
    n_tiles = pl.cdiv(B, TB)
    B_pad = n_tiles * TB

    # fused feature pad + batch pad (single HBM pass; skipped if aligned)
    pad_rows = B_pad - B
    pad_cols = DIM - F
    if pad_rows or pad_cols:
        x = jnp.pad(x, ((0, pad_rows), (0, pad_cols)))

    m_hi, m_lo = _get_observable_matrices(weights)        # (512, 512) bf16 x2, cached

    vmem_limit = (48 if TB >= 1024 else 32) * 1024 * 1024

    out = pl.pallas_call(
        qnn_kernel,
        out_shape=jax.ShapeDtypeStruct((B_pad, 1), jnp.float32),
        grid=(n_tiles,),
        in_specs=[
            pl.BlockSpec((TB, DIM), lambda i: (i, 0)),    # batch tile, pipelined
            pl.BlockSpec((DIM, DIM), lambda i: (0, 0)),   # M_hi: constant idx -> DMA'd once
            pl.BlockSpec((DIM, DIM), lambda i: (0, 0)),   # M_lo: constant idx -> DMA'd once
        ],
        out_specs=pl.BlockSpec((TB, 1), lambda i: (i, 0)),
        compiler_params=pltpu.CompilerParams(
            dimension_semantics=("parallel",),
            vmem_limit_bytes=vmem_limit,
        ),
    )(x, m_hi, m_lo)
    return out[:B, 0]


# ----------------------------------- reference (numpy) -----------------------------------
def _reference(x, weights):
    U = build_sel_unitary(weights)
    z = _zsign()
    outs = []
    for row in np.asarray(x, dtype=np.float64):
        v = np.zeros(DIM, dtype=np.float64)
        n = min(len(row), DIM)
        v[:n] = row[:n]
        nrm = np.linalg.norm(v)
        if nrm > 0:
            v = v / nrm
        psi = U @ v.astype(np.complex128)
        outs.append(float(np.sum(np.abs(psi) ** 2 * z)))
    return np.array(outs)


if __name__ == "__main__":
    key = jax.random.PRNGKey(0)
    kw, kx = jax.random.split(key)
    # nn.Parameter(torch.randn((3, 9, 3)) * 0.1) -> deterministic synthetic init
    weights = jax.random.normal(kw, (N_LAYERS, N_QUBITS, 3), dtype=jnp.float32) * 0.1
    # batch of 2 samples, 100 features each (< 512 -> exercises zero-padding)
    x = jax.random.normal(kx, (2, 100), dtype=jnp.float32)

    out = jax.block_until_ready(quantum_nn_forward(x, weights))

    ref = _reference(np.asarray(x), np.asarray(weights))
    assert out.shape == (2,)
    assert np.all(np.isfinite(np.asarray(out)))
    assert np.allclose(np.asarray(out), ref, atol=1e-4), (np.asarray(out), ref)
    print("KERNEL_OK")
</pallas_src>

<mosaic_0001>
module attributes {stable_mosaic.version = 11 : i64} {
  func.func @qnn_kernel(%arg0: i32, %arg1: memref<8x512xf32, #tpu.memory_space<vmem>>, %arg2: memref<512x512xbf16, #tpu.memory_space<vmem>>, %arg3: memref<512x512xbf16, #tpu.memory_space<vmem>>, %arg4: memref<8x1xf32, #tpu.memory_space<vmem>>) attributes {dimension_semantics = [#tpu.dimension_semantics<parallel>], iteration_bounds = array<i64: 1>, scalar_prefetch = 0 : i64, scratch_operands = 0 : i64, tpu.core_type = #tpu.core_type<tc>, window_params = [{transform_indices = @transform_0, window_bounds = array<i64: 8, 512>}, {pipeline_mode = #tpu.pipeline_mode<synchronous>, transform_indices = @transform_1, window_bounds = array<i64: 512, 512>}, {pipeline_mode = #tpu.pipeline_mode<synchronous>, transform_indices = @transform_2, window_bounds = array<i64: 512, 512>}, {transform_indices = @transform_3, window_bounds = array<i64: 8, 1>}]} {
    %c0 = arith.constant 0 : index
    %c0_0 = arith.constant 0 : index
    %0 = vector.load %arg1[%c0, %c0_0] : memref<8x512xf32, #tpu.memory_space<vmem>>, vector<8x512xf32>
    %1 = arith.mulf %0, %0 : vector<8x512xf32>
    %cst = arith.constant dense<0.000000e+00> : vector<8xf32>
    %2 = vector.multi_reduction <add>, %1, %cst [1] : vector<8x512xf32> to vector<8xf32>
    %3 = vector.shape_cast %2 : vector<8xf32> to vector<8x1xf32>
    %cst_1 = arith.constant 0.000000e+00 : f32
    %4 = vector.broadcast %cst_1 : f32 to vector<8x1xf32>
    %5 = arith.cmpf ogt, %3, %4 : vector<8x1xf32>
    %6 = math.rsqrt %3 : vector<8x1xf32>
    %cst_2 = arith.constant 0.000000e+00 : f32
    %7 = vector.broadcast %cst_2 : f32 to vector<8x1xf32>
    %8 = arith.select %5, %6, %7 : vector<8x1xi1>, vector<8x1xf32>
    %9 = vector.broadcast %8 : vector<8x1xf32> to vector<8x512xf32>
    %10 = arith.mulf %0, %9 : vector<8x512xf32>
    %11 = arith.truncf %10 : vector<8x512xf32> to vector<8x512xbf16>
    %12 = arith.extf %11 : vector<8x512xbf16> to vector<8x512xf32>
    %13 = arith.subf %10, %12 : vector<8x512xf32>
    %14 = arith.truncf %13 : vector<8x512xf32> to vector<8x512xbf16>
    %c0_3 = arith.constant 0 : index
    %c0_4 = arith.constant 0 : index
    %15 = vector.load %arg2[%c0_3, %c0_4] : memref<512x512xbf16, #tpu.memory_space<vmem>>, vector<512x512xbf16>
    %c0_5 = arith.constant 0 : index
    %c0_6 = arith.constant 0 : index
    %16 = vector.load %arg3[%c0_5, %c0_6] : memref<512x512xbf16, #tpu.memory_space<vmem>>, vector<512x512xbf16>
    %cst_7 = arith.constant dense<0.000000e+00> : vector<8x512xf32>
    %17 = tpu.matmul %11, %15, %cst_7 {dimension_numbers = #tpu.dot_dimension_numbers<[1], [0], [0], [1], [0, 0, 1, 1], [], []>} : vector<8x512xbf16>, vector<512x512xbf16>, vector<8x512xf32> -> vector<8x512xf32>
    %cst_8 = arith.constant dense<0.000000e+00> : vector<8x512xf32>
    %18 = tpu.matmul %11, %16, %cst_8 {dimension_numbers = #tpu.dot_dimension_numbers<[1], [0], [0], [1], [0, 0, 1, 1], [], []>} : vector<8x512xbf16>, vector<512x512xbf16>, vector<8x512xf32> -> vector<8x512xf32>
    %19 = arith.addf %17, %18 : vector<8x512xf32>
    %cst_9 = arith.constant dense<0.000000e+00> : vector<8x512xf32>
    %20 = tpu.matmul %14, %15, %cst_9 {dimension_numbers = #tpu.dot_dimension_numbers<[1], [0], [0], [1], [0, 0, 1, 1], [], []>} : vector<8x512xbf16>, vector<512x512xbf16>, vector<8x512xf32> -> vector<8x512xf32>
    %21 = arith.addf %19, %20 : vector<8x512xf32>
    %22 = arith.mulf %10, %21 : vector<8x512xf32>
    %cst_10 = arith.constant dense<0.000000e+00> : vector<8xf32>
    %23 = vector.multi_reduction <add>, %22, %cst_10 [1] : vector<8x512xf32> to vector<8xf32>
    %24 = vector.shape_cast %23 : vector<8xf32> to vector<8x1xf32>
    %c0_11 = arith.constant 0 : index
    %c0_12 = arith.constant 0 : index
    %25 = vector.load %arg4[%c0_11, %c0_12] : memref<8x1xf32, #tpu.memory_space<vmem>>, vector<8x1xf32>
    tpu.vector_store %arg4[%c0_11, %c0_12], %24 {strides = array<i32>} : memref<8x1xf32, #tpu.memory_space<vmem>>, vector<8x1xf32>,
    return
  }
  func.func @transform_0(%arg0: i32) -> (i32, i32) {
    %c0_i32 = arith.constant 0 : i32
    %c0_i32_0 = arith.constant 0 : i32
    return %arg0, %c0_i32 : i32, i32
  }
  func.func @transform_1(%arg0: i32) -> (i32, i32) {
    %c0_i32 = arith.constant 0 : i32
    %c0_i32_0 = arith.constant 0 : i32
    %c0_i32_1 = arith.constant 0 : i32
    return %c0_i32, %c0_i32_0 : i32, i32
  }
  func.func @transform_2(%arg0: i32) -> (i32, i32) {
    %c0_i32 = arith.constant 0 : i32
    %c0_i32_0 = arith.constant 0 : i32
    %c0_i32_1 = arith.constant 0 : i32
    return %c0_i32, %c0_i32_0 : i32, i32
  }
  func.func @transform_3(%arg0: i32) -> (i32, i32) {
    %c0_i32 = arith.constant 0 : i32
    %c0_i32_0 = arith.constant 0 : i32
    return %arg0, %c0_i32 : i32, i32
  }
}

</mosaic_0001>

<bundles_post_ra>
// kernel: tpu_custom_call.1
= control target key start
LH: loop header
LB: loop body
LE: loop exit
PB: predicated region body
PF: predicated region fallthrough
CT: control target
= control target key end

     0   :  { %8 = vsyncpa [#allocation3], 0  ;;  %s4346_s0 = inlined_call_operand.hbm [shape: f32[8,512], index: 0, kind: input, shape index: {}]   ;;  %s4347_s1 = inlined_call_operand.hbm [shape: bf16[512,512], index: 1, kind: input, shape index: {}]   ;;  %s4348_s2 = inlined_call_operand.hbm [shape: bf16[512,512], index: 2, kind: input, shape index: {}]   ;;  %s4349_s3 = inlined_call_operand.vmem [shape: f32[8,1], index: 3, kind: output, shape index: {}]  }
   0x1   :  { %9 = vsyncpa [#allocation5], 0  ;;  %s25_s14 = sshll.u32 %s4347_s1, 4  ;;  %s3660_s15 = smov [#allocation4]   ;;  %s26_s14 = int_to_ptr.hbm [resolvable:$true] %s25_s14 }
   0x2   :  { %s27_s16 = sshll.u32 %s3660_s15, 4  ;;  %s15_s19 = sshll.u32 %s4346_s0, 4  ;;  %s28_s16 = int_to_ptr.vmem [resolvable:$true] %s27_s16  ;;  %s16_s19 = int_to_ptr.hbm [resolvable:$true] %s15_s19 }
   0x3   :  { %s3661_s20 = smov 256   ;;  %s3662_s21 = smov 16  }
   0x4   :  { %33 = dma.hbm_to_vmem [thread:$0]  %s26_s14, 16384, %s28_s16, [#allocation5], %s3661_s20, %s3661_s20, %s3662_s21  }
   0x5   :  { %s3663_s22 = smov [#allocation2]   ;;  %s38_s26 = sshll.u32 %s4348_s2, 4  ;;  %s39_s26 = int_to_ptr.hbm [resolvable:$true] %s38_s26 }
   0x6   :  { %s17_s23 = sshll.u32 %s3663_s22, 4  ;;  %s3664_s1 = smov [#allocation6]   ;;  %s18_s23 = int_to_ptr.vmem [resolvable:$true] %s17_s23 }
   0x7   :  { %20 = dma.hbm_to_vmem [thread:$0]  %s16_s19, 512, %s18_s23, [#allocation3]  }
   0x8   :  { %s40_s27 = sshll.u32 %s3664_s1, 4  ;;  %s41_s27 = int_to_ptr.vmem [resolvable:$true] %s40_s27 }
   0x9   :  { %46 = dma.hbm_to_vmem [thread:$0]  %s39_s26, 16384, %s41_s27, [#allocation5], %s3661_s20, %s3661_s20, %s3662_s21  }
   0xa   :  { %3656 = dma.done.wait [#allocation3], 512  }
   0xb   :  { %3657 = vsyncadd [#allocation3], 4294966784 }
   0xc   :  { %3658 = dma.done.wait [#allocation5], 32768  }
   0xd   :  { %3659 = vsyncadd [#allocation5], 4294934528  ;;  %v3694_v0 = vld [vmem:[#allocation2] sm:$0xff]  ;;  %v3696_v1 = vld [vmem:[#allocation2 + $0x8] sm:$0xff]  ;;  %vm2289_vm4 = vcmask 7168  }
   0xe   :  { %v3698_v2 = vld [vmem:[#allocation2 + $0x10] sm:$0xff]  ;;  %v3700_v3 = vld [vmem:[#allocation2 + $0x18] sm:$0xff]  ;;  %v63_v4 = vmul.f32 %v3694_v0, %v3694_v0  ;;  %v64_v5 = vmul.f32 %v3696_v1, %v3696_v1  ;;  %v2411_v7 = vld [vmem:[#allocation6 + $0xe0] sm:$0xf] }
   0xf   :  { %v65_v6 = vmul.f32 %v3698_v2, %v3698_v2  ;;  %v3479_v8 = vld [vmem:[#allocation6 + $0xec] sm:$0xf0]  ;;  %v2539_v10 = vld [vmem:[#allocation6 + $0x1e0] sm:$0xf]  ;;  %v66_v13 = vmul.f32 %v3700_v3, %v3700_v3 }
  0x10   :  { %v2412_v9 = vor.u32 %v3479_v8, %v2411_v7  ;;  %v3511_v11 = vld [vmem:[#allocation6 + $0x1ec] sm:$0xf0]  ;;  %v2667_v12 = vld [vmem:[#allocation6 + $0x2e0] sm:$0xf]  ;;  %v67_v14 = vadd.f32 %v64_v5, %v63_v4 }
  0x11   :  { %v2540_v15 = vor.u32 %v3511_v11, %v2539_v10  ;;  %v3543_v16 = vld [vmem:[#allocation6 + $0x2ec] sm:$0xf0]  ;;  %v2795_v17 = vld [vmem:[#allocation6 + $0x3e0] sm:$0xf] }
  0x12   :  { %v3575_v18 = vld [vmem:[#allocation6 + $0x3ec] sm:$0xf0]  ;;  %1012 = vmatpush.bf16.msra.mxu0 %v2412_v9  ;;  %v2668_v19 = vor.u32 %v3543_v16, %v2667_v12  ;;  %v2395_v21 = vld [vmem:[#allocation6 + $0xc0] sm:$0xf]  ;;  %v68_v24 = vadd.f32 %v67_v14, %v65_v6 }
  0x13   :  { %v2796_v20 = vor.u32 %v3575_v18, %v2795_v17  ;;  %v3475_v22 = vld [vmem:[#allocation6 + $0xcc] sm:$0xf0]  ;;  %v2523_v23 = vld [vmem:[#allocation6 + $0x1c0] sm:$0xf]  ;;  %1025 = vmatpush.bf16.msra.mxu1 %v2540_v15 }
  0x14   :  { %v2396_v25 = vor.u32 %v3475_v22, %v2395_v21  ;;  %v3507_v26 = vld [vmem:[#allocation6 + $0x1cc] sm:$0xf0]  ;;  %v2651_v27 = vld [vmem:[#allocation6 + $0x2c0] sm:$0xf]  ;;  %1038 = vmatpush.bf16.msra.mxu2 %v2668_v19  ;;  %v69_v34 = vadd.f32 %v68_v24, %v66_v13 }
  0x15   :  { %v3539_v28 = vld [vmem:[#allocation6 + $0x2cc] sm:$0xf0]  ;;  %1051 = vmatpush.bf16.msra.mxu3 %v2796_v20  ;;  %v2524_v29 = vor.u32 %v3507_v26, %v2523_v23  ;;  %v2779_v31 = vld [vmem:[#allocation6 + $0x3c0] sm:$0xf] }
  0x16   :  { %v2652_v30 = vor.u32 %v3539_v28, %v2651_v27  ;;  %v3571_v32 = vld [vmem:[#allocation6 + $0x3cc] sm:$0xf0]  ;;  %v2379_v33 = vld [vmem:[#allocation6 + $0xa0] sm:$0xf]  ;;  %1013 = vmatpush.bf16.msra.mxu0 %v2396_v25  ;;  %70 = vadd.xlane.f32.xlu0 %v69_v34 }
  0x17   :  { %v2780_v35 = vor.u32 %v3571_v32, %v2779_v31  ;;  %v3471_v36 = vld [vmem:[#allocation6 + $0xac] sm:$0xf0]  ;;  %v2507_v37 = vld [vmem:[#allocation6 + $0x1a0] sm:$0xf]  ;;  %1026 = vmatpush.bf16.msra.mxu1 %v2524_v29 }
  0x18   :  { %v3503_v38 = vld [vmem:[#allocation6 + $0x1ac] sm:$0xf0]  ;;  %v2380_v39 = vor.u32 %v3471_v36, %v2379_v33  ;;  %v2635_v40 = vld [vmem:[#allocation6 + $0x2a0] sm:$0xf]  ;;  %1039 = vmatpush.bf16.msra.mxu2 %v2652_v30 }
  0x19   :  { %v3535_v41 = vld [vmem:[#allocation6 + $0x2ac] sm:$0xf0]  ;;  %v2763_v42 = vld [vmem:[#allocation6 + $0x3a0] sm:$0xf]  ;;  %v2508_v43 = vor.u32 %v3503_v38, %v2507_v37  ;;  %1052 = vmatpush.bf16.msra.mxu3 %v2780_v35 }
  0x1a   :  { %v3567_v44 = vld [vmem:[#allocation6 + $0x3ac] sm:$0xf0]  ;;  %v2363_v45 = vld [vmem:[#allocation6 + $0x80] sm:$0xf]  ;;  %v2636_v47 = vor.u32 %v3535_v41, %v2635_v40  ;;  %1014 = vmatpush.bf16.msra.mxu0 %v2380_v39  ;;  %v3477_v41 = vld [vmem:[#allocation6 + $0xe4] sm:$0xf] }
  0x1b   :  { %v3467_v46 = vld [vmem:[#allocation6 + $0x8c] sm:$0xf0]  ;;  %v2764_v48 = vor.u32 %v3567_v44, %v2763_v42  ;;  %v2491_v49 = vld [vmem:[#allocation6 + $0x180] sm:$0xf]  ;;  %1027 = vmatpush.bf16.msra.mxu1 %v2508_v43  ;;  %v2413_v42 = vld [vmem:[#allocation6 + $0xf0] sm:$0xf0] }
  0x1c   :  { %v3499_v50 = vld [vmem:[#allocation6 + $0x18c] sm:$0xf0]  ;;  %v2619_v51 = vld [vmem:[#allocation6 + $0x280] sm:$0xf]  ;;  %v2364_v55 = vor.u32 %v3467_v46, %v2363_v45  ;;  %1040 = vmatpush.bf16.msra.mxu2 %v2636_v47  ;;  %v3509_v45 = vld [vmem:[#allocation6 + $0x1e4] sm:$0xf] }
  0x1d   :  { %v3531_v52 = vld [vmem:[#allocation6 + $0x28c] sm:$0xf0]  ;;  %v2747_v53 = vld [vmem:[#allocation6 + $0x380] sm:$0xf]  ;;  %v2492_v56 = vor.u32 %v3499_v50, %v2491_v49  ;;  %1053 = vmatpush.bf16.msra.mxu3 %v2764_v48  ;;  %v2541_v47 = vld [vmem:[#allocation6 + $0x1f0] sm:$0xf0] }
  0x1e   :  { %v3563_v54 = vld [vmem:[#allocation6 + $0x38c] sm:$0xf0]  ;;  %v2347_v57 = vld [vmem:[#allocation6 + $0x60] sm:$0xf]  ;;  %v2620_v59 = vor.u32 %v3531_v52, %v2619_v51  ;;  %1015 = vmatpush.bf16.msra.mxu0 %v2364_v55  ;;  %v3541_v48 = vld [vmem:[#allocation6 + $0x2e4] sm:$0xf]  ;;  %v2416_v51 = vor.u32 %v3477_v41, %v2413_v42 }
  0x1f   :  { %v3463_v58 = vld [vmem:[#allocation6 + $0x6c] sm:$0xf0]  ;;  %v2748_v60 = vor.u32 %v3563_v54, %v2747_v53  ;;  %v2475_v61 = vld [vmem:[#allocation6 + $0x160] sm:$0xf]  ;;  %1028 = vmatpush.bf16.msra.mxu1 %v2492_v56  ;;  %v2669_v49 = vld [vmem:[#allocation6 + $0x2f0] sm:$0xf0]  ;;  %v2544_v56 = vor.u32 %v3509_v45, %v2541_v47 }
  0x20   :  { %v3495_v62 = vld [vmem:[#allocation6 + $0x16c] sm:$0xf0]  ;;  %v2603_v63 = vld [vmem:[#allocation6 + $0x260] sm:$0xf]  ;;  %v2348_v7 = vor.u32 %v3463_v58, %v2347_v57  ;;  %1041 = vmatpush.bf16.msra.mxu2 %v2620_v59  ;;  %v3573_v52 = vld [vmem:[#allocation6 + $0x3e4] sm:$0xf]  ;;  %v2672_v57 = vor.u32 %v3541_v48, %v2669_v49 }
  0x21   :  { %v3527_v4 = vld [vmem:[#allocation6 + $0x26c] sm:$0xf0]  ;;  %v2731_v5 = vld [vmem:[#allocation6 + $0x360] sm:$0xf]  ;;  %v2476_v8 = vor.u32 %v3495_v62, %v2475_v61  ;;  %1054 = vmatpush.bf16.msra.mxu3 %v2748_v60  ;;  %v2797_v53 = vld [vmem:[#allocation6 + $0x3f0] sm:$0xf0] }
  0x22   :  { %v3559_v6 = vld [vmem:[#allocation6 + $0x36c] sm:$0xf0]  ;;  %v2331_v9 = vld [vmem:[#allocation6 + $0x40] sm:$0xf]  ;;  %v2604_v11 = vor.u32 %v3527_v4, %v2603_v63  ;;  %1016 = vmatpush.bf16.msra.mxu0 %v2348_v7  ;;  %v2800_v58 = vor.u32 %v3573_v52, %v2797_v53  ;;  %v3473_v59 = vld [vmem:[#allocation6 + $0xc4] sm:$0xf] }
  0x23   :  { %v3459_v10 = vld [vmem:[#allocation6 + $0x4c] sm:$0xf0]  ;;  %v2732_v12 = vor.u32 %v3559_v6, %v2731_v5  ;;  %v2459_v13 = vld [vmem:[#allocation6 + $0x140] sm:$0xf]  ;;  %1029 = vmatpush.bf16.msra.mxu1 %v2476_v8  ;;  %v2397_v60 = vld [vmem:[#allocation6 + $0xd0] sm:$0xf0] }
  0x24   :  { %v3491_v14 = vld [vmem:[#allocation6 + $0x14c] sm:$0xf0]  ;;  %v2587_v15 = vld [vmem:[#allocation6 + $0x240] sm:$0xf]  ;;  %v2332_v19 = vor.u32 %v3459_v10, %v2331_v9  ;;  %1042 = vmatpush.bf16.msra.mxu2 %v2604_v11  ;;  %v3505_v61 = vld [vmem:[#allocation6 + $0x1c4] sm:$0xf]  ;;  %v2400_v62 = vor.u32 %v3473_v59, %v2397_v60 }
  0x25   :  { %v3523_v16 = vld [vmem:[#allocation6 + $0x24c] sm:$0xf0]  ;;  %v2715_v17 = vld [vmem:[#allocation6 + $0x340] sm:$0xf]  ;;  %v2460_v20 = vor.u32 %v3491_v14, %v2459_v13  ;;  %1055 = vmatpush.bf16.msra.mxu3 %v2732_v12  ;;  %v2525_v63 = vld [vmem:[#allocation6 + $0x1d0] sm:$0xf0] }
  0x26   :  { %v3555_v18 = vld [vmem:[#allocation6 + $0x34c] sm:$0xf0]  ;;  %v2315_v21 = vld [vmem:[#allocation6 + $0x20] sm:$0xf]  ;;  %v2588_v23 = vor.u32 %v3523_v16, %v2587_v15  ;;  %1017 = vmatpush.bf16.msra.mxu0 %v2332_v19  ;;  %v3537_v4 = vld [vmem:[#allocation6 + $0x2c4] sm:$0xf]  ;;  %v2528_v6 = vor.u32 %v3505_v61, %v2525_v63 }
  0x27   :  { %v3455_v22 = vld [vmem:[#allocation6 + $0x2c] sm:$0xf0]  ;;  %v2716_v24 = vor.u32 %v3555_v18, %v2715_v17  ;;  %v2443_v25 = vld [vmem:[#allocation6 + $0x120] sm:$0xf]  ;;  %1030 = vmatpush.bf16.msra.mxu1 %v2460_v20  ;;  %v2653_v5 = vld [vmem:[#allocation6 + $0x2d0] sm:$0xf0] }
  0x28   :  { %v3487_v26 = vld [vmem:[#allocation6 + $0x12c] sm:$0xf0]  ;;  %v2571_v27 = vld [vmem:[#allocation6 + $0x220] sm:$0xf]  ;;  %v2316_v31 = vor.u32 %v3455_v22, %v2315_v21  ;;  %1043 = vmatpush.bf16.msra.mxu2 %v2588_v23  ;;  %v2656_v7 = vor.u32 %v3537_v4, %v2653_v5  ;;  %v3569_v8 = vld [vmem:[#allocation6 + $0x3c4] sm:$0xf] }
  0x29   :  { %v3519_v28 = vld [vmem:[#allocation6 + $0x22c] sm:$0xf0]  ;;  %v2699_v29 = vld [vmem:[#allocation6 + $0x320] sm:$0xf]  ;;  %v2444_v34 = vor.u32 %v3487_v26, %v2443_v25  ;;  %1056 = vmatpush.bf16.msra.mxu3 %v2716_v24  ;;  %v2781_v9 = vld [vmem:[#allocation6 + $0x3d0] sm:$0xf0] }
  0x2a   :  { %v3551_v30 = vld [vmem:[#allocation6 + $0x32c] sm:$0xf0]  ;;  %v2299_v32 = vld [vmem:[#allocation6] sm:$0xf]  ;;  %v2572_v38 = vor.u32 %v3519_v28, %v2571_v27  ;;  %1018 = vmatpush.bf16.msra.mxu0 %v2316_v31  ;;  %v2784_v10 = vor.u32 %v3569_v8, %v2781_v9  ;;  %v3469_v11 = vld [vmem:[#allocation6 + $0xa4] sm:$0xf] }
  0x2b   :  { %v3451_v33 = vld [vmem:[#allocation6 + $0xc] sm:$0xf0]  ;;  %v2427_v35 = vld [vmem:[#allocation6 + $0x100] sm:$0xf]  ;;  %v2700_v39 = vor.u32 %v3551_v30, %v2699_v29  ;;  %1031 = vmatpush.bf16.msra.mxu1 %v2444_v34  ;;  %v2381_v12 = vld [vmem:[#allocation6 + $0xb0] sm:$0xf0] }
  0x2c   :  { %v3483_v36 = vld [vmem:[#allocation6 + $0x10c] sm:$0xf0]  ;;  %v2555_v37 = vld [vmem:[#allocation6 + $0x200] sm:$0xf]  ;;  %v2300_v46 = vor.u32 %v3451_v33, %v2299_v32  ;;  %1044 = vmatpush.bf16.msra.mxu2 %v2572_v38  ;;  %v3501_v13 = vld [vmem:[#allocation6 + $0x1a4] sm:$0xf]  ;;  %v2384_v14 = vor.u32 %v3469_v11, %v2381_v12 }
  0x2d   :  { %v3515_v40 = vld [vmem:[#allocation6 + $0x20c] sm:$0xf0]  ;;  %v2683_v43 = vld [vmem:[#allocation6 + $0x300] sm:$0xf]  ;;  %v2428_v50 = vor.u32 %v3483_v36, %v2427_v35  ;;  %1057 = vmatpush.bf16.msra.mxu3 %v2700_v39  ;;  %v2509_v15 = vld [vmem:[#allocation6 + $0x1b0] sm:$0xf0] }
  0x2e   :  { %v3547_v44 = vld [vmem:[#allocation6 + $0x30c] sm:$0xf0]  ;;  %v2556_v54 = vor.u32 %v3515_v40, %v2555_v37  ;;  %1019 = vmatpush.bf16.msra.mxu0 %v2300_v46  ;;  %v3533_v16 = vld [vmem:[#allocation6 + $0x2a4] sm:$0xf]  ;;  %v2637_v17 = vld [vmem:[#allocation6 + $0x2b0] sm:$0xf0]  ;;  %v2512_v18 = vor.u32 %v3501_v13, %v2509_v15 }
  0x2f   :  { %v2684_v55 = vor.u32 %v3547_v44, %v2683_v43  ;;  %1032 = vmatpush.bf16.msra.mxu1 %v2428_v50  ;;  %v2640_v19 = vor.u32 %v3533_v16, %v2637_v17  ;;  %v3565_v20 = vld [vmem:[#allocation6 + $0x3a4] sm:$0xf]  ;;  %v2765_v21 = vld [vmem:[#allocation6 + $0x3b0] sm:$0xf0] }
  0x30   :  { %1045 = vmatpush.bf16.msra.mxu2 %v2556_v54  ;;  %v2768_v22 = vor.u32 %v3565_v20, %v2765_v21  ;;  %v3465_v23 = vld [vmem:[#allocation6 + $0x84] sm:$0xf]  ;;  %v2365_v24 = vld [vmem:[#allocation6 + $0x90] sm:$0xf0] }
  0x31   :  { %1058 = vmatpush.bf16.msra.mxu3 %v2684_v55  ;;  %v3497_v25 = vld [vmem:[#allocation6 + $0x184] sm:$0xf]  ;;  %v2368_v26 = vor.u32 %v3465_v23, %v2365_v24  ;;  %v2493_v27 = vld [vmem:[#allocation6 + $0x190] sm:$0xf0] }
  0x32   :  { %1064 = vmatpush.bf16.msrb.mxu0 %v2416_v51  ;;  %v3529_v28 = vld [vmem:[#allocation6 + $0x284] sm:$0xf]  ;;  %v2621_v29 = vld [vmem:[#allocation6 + $0x290] sm:$0xf0]  ;;  %v2496_v30 = vor.u32 %v3497_v25, %v2493_v27 }
  0x33   :  { %1077 = vmatpush.bf16.msrb.mxu1 %v2544_v56  ;;  %v2624_v31 = vor.u32 %v3529_v28, %v2621_v29  ;;  %v3561_v32 = vld [vmem:[#allocation6 + $0x384] sm:$0xf]  ;;  %v2749_v33 = vld [vmem:[#allocation6 + $0x390] sm:$0xf0] }
  0x34   :  { %1090 = vmatpush.bf16.msrb.mxu2 %v2672_v57  ;;  %v2752_v34 = vor.u32 %v3561_v32, %v2749_v33  ;;  %v3461_v35 = vld [vmem:[#allocation6 + $0x64] sm:$0xf]  ;;  %v2349_v36 = vld [vmem:[#allocation6 + $0x70] sm:$0xf0] }
  0x35   :  { %1103 = vmatpush.bf16.msrb.mxu3 %v2800_v58  ;;  %v3493_v37 = vld [vmem:[#allocation6 + $0x164] sm:$0xf]  ;;  %v2352_v38 = vor.u32 %v3461_v35, %v2349_v36  ;;  %v2477_v39 = vld [vmem:[#allocation6 + $0x170] sm:$0xf0]  ;;  %v2419_v36 = vld [vmem:[#allocation6 + $0xe8] sm:$0xf] }
  0x36   :  { %1065 = vmatpush.bf16.msrb.mxu0 %v2400_v62  ;;  %v3525_v40 = vld [vmem:[#allocation6 + $0x264] sm:$0xf]  ;;  %v2605_v41 = vld [vmem:[#allocation6 + $0x270] sm:$0xf0]  ;;  %v2480_v42 = vor.u32 %v3493_v37, %v2477_v39  ;;  %v2547_v39 = vld [vmem:[#allocation6 + $0x1e8] sm:$0xf] }
  0x37   :  { %1078 = vmatpush.bf16.msrb.mxu1 %v2528_v6  ;;  %v2608_v43 = vor.u32 %v3525_v40, %v2605_v41  ;;  %v3557_v44 = vld [vmem:[#allocation6 + $0x364] sm:$0xf]  ;;  %v2733_v45 = vld [vmem:[#allocation6 + $0x370] sm:$0xf0]  ;;  %v3512_v40 = vld [vmem:[#allocation6 + $0x1f4] sm:$0xf0] }
  0x38   :  { %1091 = vmatpush.bf16.msrb.mxu2 %v2656_v7  ;;  %v2736_v46 = vor.u32 %v3557_v44, %v2733_v45  ;;  %v3457_v47 = vld [vmem:[#allocation6 + $0x44] sm:$0xf]  ;;  %v2333_v48 = vld [vmem:[#allocation6 + $0x50] sm:$0xf0]  ;;  %v2803_v44 = vld [vmem:[#allocation6 + $0x3e8] sm:$0xf] }
  0x39   :  { %1104 = vmatpush.bf16.msrb.mxu3 %v2784_v10  ;;  %v3489_v49 = vld [vmem:[#allocation6 + $0x144] sm:$0xf]  ;;  %v2336_v50 = vor.u32 %v3457_v47, %v2333_v48  ;;  %v2461_v51 = vld [vmem:[#allocation6 + $0x150] sm:$0xf0]  ;;  %v3576_v45 = vld [vmem:[#allocation6 + $0x3f4] sm:$0xf0]  ;;  %v2548_v47 = vor.u32 %v3512_v40, %v2547_v39 }
  0x3a   :  { %1066 = vmatpush.bf16.msrb.mxu0 %v2384_v14  ;;  %v3521_v52 = vld [vmem:[#allocation6 + $0x244] sm:$0xf]  ;;  %v2589_v53 = vld [vmem:[#allocation6 + $0x250] sm:$0xf0]  ;;  %v2464_v54 = vor.u32 %v3489_v49, %v2461_v51  ;;  %v2611_v39 = vld [vmem:[#allocation6 + $0x268] sm:$0xf] }
  0x3b   :  { %1079 = vmatpush.bf16.msrb.mxu1 %v2512_v18  ;;  %v2592_v55 = vor.u32 %v3521_v52, %v2589_v53  ;;  %v3553_v56 = vld [vmem:[#allocation6 + $0x344] sm:$0xf]  ;;  %v2717_v57 = vld [vmem:[#allocation6 + $0x350] sm:$0xf0]  ;;  %v2403_v52 = vld [vmem:[#allocation6 + $0xc8] sm:$0xf] }
  0x3c   :  { %1092 = vmatpush.bf16.msrb.mxu2 %v2640_v19  ;;  %v2720_v58 = vor.u32 %v3553_v56, %v2717_v57  ;;  %v3453_v59 = vld [vmem:[#allocation6 + $0x24] sm:$0xf]  ;;  %v2317_v60 = vld [vmem:[#allocation6 + $0x30] sm:$0xf0]  ;;  %v3476_v53 = vld [vmem:[#allocation6 + $0xd4] sm:$0xf0] }
  0x3d   :  { %1105 = vmatpush.bf16.msrb.mxu3 %v2768_v22  ;;  %v3485_v61 = vld [vmem:[#allocation6 + $0x124] sm:$0xf]  ;;  %v2320_v62 = vor.u32 %v3453_v59, %v2317_v60  ;;  %v2445_v63 = vld [vmem:[#allocation6 + $0x130] sm:$0xf0]  ;;  %v2531_v56 = vld [vmem:[#allocation6 + $0x1c8] sm:$0xf] }
  0x3e   :  { %1067 = vmatpush.bf16.msrb.mxu0 %v2368_v26  ;;  %v3517_v4 = vld [vmem:[#allocation6 + $0x224] sm:$0xf]  ;;  %v2573_v5 = vld [vmem:[#allocation6 + $0x230] sm:$0xf0]  ;;  %v2448_v6 = vor.u32 %v3485_v61, %v2445_v63  ;;  %v3508_v57 = vld [vmem:[#allocation6 + $0x1d4] sm:$0xf0] }
  0x3f   :  { %1080 = vmatpush.bf16.msrb.mxu1 %v2496_v30  ;;  %v2576_v7 = vor.u32 %v3517_v4, %v2573_v5  ;;  %v3549_v8 = vld [vmem:[#allocation6 + $0x324] sm:$0xf]  ;;  %v2701_v9 = vld [vmem:[#allocation6 + $0x330] sm:$0xf0]  ;;  %v3540_v59 = vld [vmem:[#allocation6 + $0x2d4] sm:$0xf0]  ;;  %v2532_v63 = vor.u32 %v3508_v57, %v2531_v56 }
  0x40   :  { %1093 = vmatpush.bf16.msrb.mxu2 %v2624_v31  ;;  %v2704_v10 = vor.u32 %v3549_v8, %v2701_v9  ;;  %v3449_v11 = vld [vmem:[#allocation6 + $0x4] sm:$0xf]  ;;  %v2301_v12 = vld [vmem:[#allocation6 + $0x10] sm:$0xf0]  ;;  %v2787_v60 = vld [vmem:[#allocation6 + $0x3c8] sm:$0xf] }
  0x41   :  { %1106 = vmatpush.bf16.msrb.mxu3 %v2752_v34  ;;  %v3481_v13 = vld [vmem:[#allocation6 + $0x104] sm:$0xf]  ;;  %v2304_v14 = vor.u32 %v3449_v11, %v2301_v12  ;;  %v2429_v15 = vld [vmem:[#allocation6 + $0x110] sm:$0xf0]  ;;  %v3572_v61 = vld [vmem:[#allocation6 + $0x3d4] sm:$0xf0] }
  0x42   :  { %1068 = vmatpush.bf16.msrb.mxu0 %v2352_v38  ;;  %v3513_v16 = vld [vmem:[#allocation6 + $0x204] sm:$0xf]  ;;  %v2557_v17 = vld [vmem:[#allocation6 + $0x210] sm:$0xf0]  ;;  %v2432_v18 = vor.u32 %v3481_v13, %v2429_v15  ;;  %v2387_v4 = vld [vmem:[#allocation6 + $0xa8] sm:$0xf] }
  0x43   :  { %1081 = vmatpush.bf16.msrb.mxu1 %v2480_v42  ;;  %v2560_v19 = vor.u32 %v3513_v16, %v2557_v17  ;;  %v3545_v20 = vld [vmem:[#allocation6 + $0x304] sm:$0xf]  ;;  %v2685_v21 = vld [vmem:[#allocation6 + $0x310] sm:$0xf0]  ;;  %v3472_v5 = vld [vmem:[#allocation6 + $0xb4] sm:$0xf0] }
  0x44   :  { %1094 = vmatpush.bf16.msrb.mxu2 %v2608_v43  ;;  %v2688_v22 = vor.u32 %v3545_v20, %v2685_v21  ;;  %v3544_v43 = vld [vmem:[#allocation6 + $0x2f4] sm:$0xf0]  ;;  %v2515_v8 = vld [vmem:[#allocation6 + $0x1a8] sm:$0xf] }
  0x45   :  { %1107 = vmatpush.bf16.msrb.mxu3 %v2736_v46  ;;  %v3504_v9 = vld [vmem:[#allocation6 + $0x1b4] sm:$0xf0]  ;;  %v2771_v12 = vld [vmem:[#allocation6 + $0x3a8] sm:$0xf] }
  0x46   :  { %1069 = vmatpush.bf16.msrb.mxu0 %v2336_v50  ;;  %v3536_v11 = vld [vmem:[#allocation6 + $0x2b4] sm:$0xf0]  ;;  %v2516_v15 = vor.u32 %v3504_v9, %v2515_v8  ;;  %v2371_v16 = vld [vmem:[#allocation6 + $0x88] sm:$0xf] }
  0x47   :  { %1082 = vmatpush.bf16.msrb.mxu1 %v2464_v54  ;;  %v3568_v13 = vld [vmem:[#allocation6 + $0x3b4] sm:$0xf0]  ;;  %v2499_v20 = vld [vmem:[#allocation6 + $0x188] sm:$0xf] }
  0x48   :  { %1095 = vmatpush.bf16.msrb.mxu2 %v2592_v55  ;;  %v2804_v55 = vor.u32 %v3576_v45, %v2803_v44  ;;  %v3468_v17 = vld [vmem:[#allocation6 + $0x94] sm:$0xf0]  ;;  %v2307_v8 = vld [vmem:[#allocation6 + $0x8] sm:$0xf] }
  0x49   :  { %1108 = vmatpush.bf16.msrb.mxu3 %v2720_v58  ;;  %v2659_v58 = vld [vmem:[#allocation6 + $0x2c8] sm:$0xf]  ;;  %v3500_v21 = vld [vmem:[#allocation6 + $0x194] sm:$0xf0] }
  0x4a   :  { %1070 = vmatpush.bf16.msrb.mxu0 %v2320_v62  ;;  %v2404_v62 = vor.u32 %v3476_v53, %v2403_v52  ;;  %v3528_v40 = vld [vmem:[#allocation6 + $0x274] sm:$0xf0]  ;;  %v2595_v52 = vld [vmem:[#allocation6 + $0x248] sm:$0xf] }
  0x4b   :  { %1083 = vmatpush.bf16.msrb.mxu1 %v2448_v6  ;;  %v2660_v6 = vor.u32 %v3540_v59, %v2659_v58  ;;  %v2612_v44 = vor.u32 %v3528_v40, %v2611_v39  ;;  %v3524_v53 = vld [vmem:[#allocation6 + $0x254] sm:$0xf0]  ;;  %v2323_v58 = vld [vmem:[#allocation6 + $0x28] sm:$0xf]  ;;  %v3474_v39 = vld [vmem:[#allocation6 + $0xcc] sm:$0xf] }
  0x4c   :  { %1096 = vmatpush.bf16.msrb.mxu2 %v2576_v7  ;;  %v2788_v7 = vor.u32 %v3572_v61, %v2787_v60  ;;  %v3456_v59 = vld [vmem:[#allocation6 + $0x34] sm:$0xf0]  ;;  %v2596_v60 = vor.u32 %v3524_v53, %v2595_v52  ;;  %v2405_v40 = vld [vmem:[#allocation6 + $0xd8] sm:$0xf0]  ;;  %v3470_v52 = vld [vmem:[#allocation6 + $0xac] sm:$0xf] }
  0x4d   :  { %1109 = vmatpush.bf16.msrb.mxu3 %v2704_v10  ;;  %v2643_v10 = vld [vmem:[#allocation6 + $0x2a8] sm:$0xf]  ;;  %v2324_v9 = vor.u32 %v3456_v59, %v2323_v58  ;;  %v2389_v53 = vld [vmem:[#allocation6 + $0xb8] sm:$0xf0]  ;;  %v3534_v58 = vld [vmem:[#allocation6 + $0x2ac] sm:$0xf] }
  0x4e   :  { %1071 = vmatpush.bf16.msrb.mxu0 %v2304_v14  ;;  %v2388_v14 = vor.u32 %v3472_v5, %v2387_v4  ;;  %v2579_v4 = vld [vmem:[#allocation6 + $0x228] sm:$0xf]  ;;  %v3520_v5 = vld [vmem:[#allocation6 + $0x234] sm:$0xf0]  ;;  %v2645_v59 = vld [vmem:[#allocation6 + $0x2b8] sm:$0xf0] }
  0x4f   :  { %1084 = vmatpush.bf16.msrb.mxu1 %v2432_v18  ;;  %v2644_v18 = vor.u32 %v3536_v11, %v2643_v10  ;;  %v3452_v11 = vld [vmem:[#allocation6 + $0x14] sm:$0xf0] }
  0x50   :  { %1097 = vmatpush.bf16.msrb.mxu2 %v2560_v19  ;;  %v2772_v19 = vor.u32 %v3568_v13, %v2771_v12  ;;  %v2435_v12 = vld [vmem:[#allocation6 + $0x108] sm:$0xf]  ;;  %v3484_v13 = vld [vmem:[#allocation6 + $0x114] sm:$0xf0] }
  0x51   :  { %1110 = vmatpush.bf16.msrb.mxu3 %v2688_v22  ;;  %v2627_v22 = vld [vmem:[#allocation6 + $0x288] sm:$0xf] }
  0x89   :  { %v71_v23 = vpop.xlane.xlu0 %70 }
  0x8a   :  { %3582 = vrsqrt.f32 %v71_v23  ;;  %vm79_vm1 = vweird.f32 %v71_v23  ;;  %vm72_vm3 = vcmp.gt.f32.partialorder %v71_v23, 0.0 }
  0x90   :  { %v3583_v24 = vpop.eup %3582 }
  0x91   :  { %v74_v25 = vmul.f32 %v3583_v24, %v71_v23  ;;  %vm80_vm0 = vweird.f32 %v3583_v24  ;;  %v3532_v23 = vld [vmem:[#allocation6 + $0x294] sm:$0xf0] }
  0x92   :  { %vm81_vm2 = vmor %vm79_vm1, %vm80_vm0 }
  0x93   :  { %v75_v26 = vmul.f32 %v3583_v24, %v74_v25  ;;  %v3564_v25 = vld [vmem:[#allocation6 + $0x394] sm:$0xf0] }
  0x95   :  { %v76_v27 = vmul.f32 0.5, %v75_v26  ;;  %v2372_v26 = vor.u32 %v3468_v17, %v2371_v16  ;;  %v2563_v16 = vld [vmem:[#allocation6 + $0x208] sm:$0xf]  ;;  %v3516_v17 = vld [vmem:[#allocation6 + $0x214] sm:$0xf0] }
  0x97   :  { %v77_v28 = vsub.f32 1.5, %v76_v27  ;;  %v2500_v27 = vor.u32 %v3500_v21, %v2499_v20  ;;  %v3478_v20 = vld [vmem:[#allocation6 + $0xec] sm:$0xf]  ;;  %v2421_v21 = vld [vmem:[#allocation6 + $0xf8] sm:$0xf0] }
  0x99   :  { %v78_v29 = vmul.f32 %v3583_v24, %v77_v28  ;;  %v2355_v28 = vld [vmem:[#allocation6 + $0x68] sm:$0xf] }
  0x9b   :  { %v82_v30 = vsel %vm81_vm2, %v3583_v24, %v78_v29  ;;  %v2755_v24 = vld [vmem:[#allocation6 + $0x388] sm:$0xf]  ;;  %v3464_v29 = vld [vmem:[#allocation6 + $0x74] sm:$0xf0] }
  0x9c   :  { %v83_v31 = vsel %vm72_vm3, %v82_v30, 0.0  ;;  %v2628_v30 = vor.u32 %v3532_v23, %v2627_v22  ;;  %v3510_v22 = vld [vmem:[#allocation6 + $0x1ec] sm:$0xf]  ;;  %v2549_v23 = vld [vmem:[#allocation6 + $0x1f8] sm:$0xf0] }
  0x9d   :  { %v3711_v32 = vmul.f32 %v83_v31, %v3694_v0  ;;  %v3714_v33 = vmul.f32 %v83_v31, %v3696_v1  ;;  %v3717_v34 = vmul.f32 %v83_v31, %v3698_v2  ;;  %v3720_v35 = vmul.f32 %v83_v31, %v3700_v3  ;;  %v3480_v0 = vld [vmem:[#allocation6 + $0xf4] sm:$0xf0]  ;;  %v2675_v1 = vld [vmem:[#allocation6 + $0x2e8] sm:$0xf] }
  0x9e   :  { %v2420_v46 = vor.u32 %v3480_v0, %v2419_v36  ;;  %v2676_v54 = vor.u32 %v3544_v43, %v2675_v1  ;;  %v2756_v31 = vor.u32 %v3564_v25, %v2755_v24  ;;  %v2483_v36 = vld [vmem:[#allocation6 + $0x168] sm:$0xf]  ;;  %v3496_v0 = vld [vmem:[#allocation6 + $0x174] sm:$0xf0]  ;;  %v3542_v24 = vld [vmem:[#allocation6 + $0x2ec] sm:$0xf]  ;;  %v2308_v25 = vor.u32 %v3452_v11, %v2307_v8 }
  0x9f   :  { %4441 = vst [vmem:[#allocation9_spill] sm:$0xff] %v3714_v33  ;;  %v3724_v37 = vpack.c.bf16 %v3714_v33, %v3711_v32  ;;  %v3728_v38 = vpack.c.bf16 %v3720_v35, %v3717_v34  ;;  %v2739_v1 = vld [vmem:[#allocation6 + $0x368] sm:$0xf]  ;;  %v3460_v43 = vld [vmem:[#allocation6 + $0x54] sm:$0xf0] }
  0xa0   :  { %4442 = vst [vmem:[#allocation10_spill] sm:$0xff] %v3717_v34  ;;  %v3498_v8 = vld [vmem:[#allocation6 + $0x18c] sm:$0xf]  ;;  %v2629_v11 = vld [vmem:[#allocation6 + $0x298] sm:$0xf0] }
  0xa1   :  { %4443 = vst [vmem:[#allocation11_spill] sm:$0xff] %v3720_v35  ;;  %v360_v41 = vunpack.c.l.b16 %v3724_v37  ;;  %v361_v2 = vunpack.c.h.b16 %v3724_v37  ;;  %v362_v3 = vunpack.c.l.b16 %v3728_v38  ;;  %v363_v42 = vunpack.c.h.b16 %v3728_v38  ;;  %v3171_v35 = vld [vmem:[#allocation4 + $0x2c8] sm:$0xf] }
  0xa3   :  { %v3734_v48 = vpack.c.b16 %v360_v41, %v360_v41  ;;  %v3736_v49 = vpack.c.b16 %v361_v2, %v361_v2  ;;  %v3738_v50 = vpack.c.b16 %v362_v3, %v362_v3  ;;  %v3740_v51 = vpack.c.b16 %v363_v42, %v363_v42  ;;  %v3560_v41 = vld [vmem:[#allocation6 + $0x374] sm:$0xf0]  ;;  %v2339_v42 = vld [vmem:[#allocation6 + $0x48] sm:$0xf] }
  0xa4   :  { %v2356_v2 = vor.u32 %v3464_v29, %v2355_v28  ;;  %v2484_v3 = vor.u32 %v3496_v0, %v2483_v36  ;;  %v2740_v45 = vor.u32 %v3560_v41, %v2739_v1  ;;  %v2340_v56 = vor.u32 %v3460_v43, %v2339_v42  ;;  %v3574_v28 = vld [vmem:[#allocation6 + $0x3ec] sm:$0xf]  ;;  %v2805_v29 = vld [vmem:[#allocation6 + $0x3f8] sm:$0xf0] }
  0xa5   :  { %1020 = vmatmul.bf16.vlgmr.msra.gmra.mxu0 %v3734_v48  ;;  %1033 = vmatmul.bf16.vlgmr.msra.gmra.mxu1 %v3736_v49  ;;  %v2424_v36 = vor.u32 %v3478_v20, %v2421_v21  ;;  %v2552_v0 = vor.u32 %v3510_v22, %v2549_v23  ;;  %v2808_v41 = vor.u32 %v3574_v28, %v2805_v29  ;;  %v3538_v42 = vld [vmem:[#allocation6 + $0x2cc] sm:$0xf]  ;;  %v2661_v43 = vld [vmem:[#allocation6 + $0x2d8] sm:$0xf0] }
  0xa6   :  { %1046 = vmatmul.bf16.vlgmr.msra.gmra.mxu2 %v3738_v50  ;;  %1059 = vmatmul.bf16.vlgmr.msra.gmra.mxu3 %v3740_v51  ;;  %v3494_v20 = vld [vmem:[#allocation6 + $0x16c] sm:$0xf]  ;;  %v2485_v21 = vld [vmem:[#allocation6 + $0x178] sm:$0xf0] }
  0xa7   :  { %1116 = vmatpush.bf16.msra.mxu0 %v2420_v46  ;;  %1129 = vmatpush.bf16.msra.mxu1 %v2548_v47  ;;  %v2467_v46 = vld [vmem:[#allocation6 + $0x148] sm:$0xf]  ;;  %v3492_v47 = vld [vmem:[#allocation6 + $0x154] sm:$0xf0]  ;;  %v3526_v22 = vld [vmem:[#allocation6 + $0x26c] sm:$0xf] }
  0xa8   :  { %1142 = vmatpush.bf16.msra.mxu2 %v2676_v54  ;;  %1155 = vmatpush.bf16.msra.mxu3 %v2804_v55  ;;  %v2723_v54 = vld [vmem:[#allocation6 + $0x348] sm:$0xf]  ;;  %v3556_v55 = vld [vmem:[#allocation6 + $0x354] sm:$0xf0]  ;;  %v2468_v57 = vor.u32 %v3492_v47, %v2467_v46  ;;  %v2408_v46 = vor.u32 %v3474_v39, %v2405_v40  ;;  %v2613_v23 = vld [vmem:[#allocation6 + $0x278] sm:$0xf0] }
  0xa9   :  { %v2724_v61 = vor.u32 %v3556_v55, %v2723_v54  ;;  %v2664_v54 = vor.u32 %v3538_v42, %v2661_v43  ;;  %v3458_v28 = vld [vmem:[#allocation6 + $0x4c] sm:$0xf]  ;;  %v2341_v29 = vld [vmem:[#allocation6 + $0x58] sm:$0xf0] }
  0xaa   :  { %v3522_v39 = vld [vmem:[#allocation6 + $0x24c] sm:$0xf]  ;;  %v2597_v40 = vld [vmem:[#allocation6 + $0x258] sm:$0xf0] }
  0xab   :  { %1117 = vmatpush.bf16.msra.mxu0 %v2404_v62  ;;  %1130 = vmatpush.bf16.msra.mxu1 %v2532_v63  ;;  %v2451_v62 = vld [vmem:[#allocation6 + $0x128] sm:$0xf]  ;;  %v3488_v63 = vld [vmem:[#allocation6 + $0x134] sm:$0xf0]  ;;  %v3454_v42 = vld [vmem:[#allocation6 + $0x2c] sm:$0xf] }
  0xac   :  { %1143 = vmatpush.bf16.msra.mxu2 %v2660_v6  ;;  %1156 = vmatpush.bf16.msra.mxu3 %v2788_v7  ;;  %v2707_v6 = vld [vmem:[#allocation6 + $0x328] sm:$0xf]  ;;  %v3552_v7 = vld [vmem:[#allocation6 + $0x334] sm:$0xf0]  ;;  %v2452_v10 = vor.u32 %v3488_v63, %v2451_v62  ;;  %v2392_v62 = vor.u32 %v3470_v52, %v2389_v53  ;;  %v2325_v43 = vld [vmem:[#allocation6 + $0x38] sm:$0xf0] }
  0xad   :  { %v3518_v52 = vld [vmem:[#allocation6 + $0x22c] sm:$0xf]  ;;  %v2581_v53 = vld [vmem:[#allocation6 + $0x238] sm:$0xf0] }
  0xaf   :  { %1118 = vmatpush.bf16.msra.mxu0 %v2388_v14  ;;  %1131 = vmatpush.bf16.msra.mxu1 %v2516_v15  ;;  %v2580_v14 = vor.u32 %v3520_v5, %v2579_v4  ;;  %v2708_v15 = vor.u32 %v3552_v7, %v2707_v6  ;;  %v3466_v4 = vld [vmem:[#allocation6 + $0x8c] sm:$0xf]  ;;  %v2373_v5 = vld [vmem:[#allocation6 + $0x98] sm:$0xf0]  ;;  %v2648_v6 = vor.u32 %v3534_v58, %v2645_v59 }
  0xb0   :  { %1144 = vmatpush.bf16.msra.mxu2 %v2644_v18  ;;  %1157 = vmatpush.bf16.msra.mxu3 %v2772_v19  ;;  %v2691_v18 = vld [vmem:[#allocation6 + $0x308] sm:$0xf]  ;;  %v3548_v19 = vld [vmem:[#allocation6 + $0x314] sm:$0xf0]  ;;  %v2309_v59 = vld [vmem:[#allocation6 + $0x18] sm:$0xf0] }
  0xb3   :  { %1119 = vmatpush.bf16.msra.mxu0 %v2372_v26  ;;  %1132 = vmatpush.bf16.msra.mxu1 %v2500_v27  ;;  %v2436_v26 = vor.u32 %v3484_v13, %v2435_v12  ;;  %v2677_v27 = vld [vmem:[#allocation6 + $0x2f8] sm:$0xf0]  ;;  %v3562_v12 = vld [vmem:[#allocation6 + $0x38c] sm:$0xf] }
  0xb4   :  { %1145 = vmatpush.bf16.msra.mxu2 %v2628_v30  ;;  %1158 = vmatpush.bf16.msra.mxu3 %v2756_v31  ;;  %v2564_v30 = vor.u32 %v3516_v17, %v2563_v16  ;;  %v2692_v31 = vor.u32 %v3548_v19, %v2691_v18  ;;  %v2680_v1 = vor.u32 %v3542_v24, %v2677_v27  ;;  %v2757_v13 = vld [vmem:[#allocation6 + $0x398] sm:$0xf0]  ;;  %v3462_v16 = vld [vmem:[#allocation6 + $0x6c] sm:$0xf] }
  0xb5   :  { %1072 = vmatmul.bf16.vlgmr.msrb.gmra.mxu0 %v3734_v48  ;;  %1085 = vmatmul.bf16.vlgmr.msrb.gmra.mxu1 %v3736_v49  ;;  %v2357_v17 = vld [vmem:[#allocation6 + $0x78] sm:$0xf0]  ;;  %v2760_v19 = vor.u32 %v3562_v12, %v2757_v13  ;;  %v3558_v24 = vld [vmem:[#allocation6 + $0x36c] sm:$0xf]  ;;  %v2488_v27 = vor.u32 %v3494_v20, %v2485_v21  ;;  %v3179_v12 = vld [vmem:[#allocation4 + $0x2e0] sm:$0xf] }
  0xb6   :  { %1098 = vmatmul.bf16.vlgmr.msrb.gmra.mxu2 %v3738_v50  ;;  %1111 = vmatmul.bf16.vlgmr.msrb.gmra.mxu3 %v3740_v51 }
  0xb7   :  { %1120 = vmatpush.bf16.msra.mxu0 %v2356_v2  ;;  %1133 = vmatpush.bf16.msra.mxu1 %v2484_v3  ;;  %v3506_v2 = vld [vmem:[#allocation6 + $0x1cc] sm:$0xf]  ;;  %v2533_v3 = vld [vmem:[#allocation6 + $0x1d8] sm:$0xf0] }
  0xb8   :  { %1146 = vmatpush.bf16.msra.mxu2 %v2612_v44  ;;  %1159 = vmatpush.bf16.msra.mxu3 %v2740_v45  ;;  %v3570_v44 = vld [vmem:[#allocation6 + $0x3cc] sm:$0xf]  ;;  %v2789_v45 = vld [vmem:[#allocation6 + $0x3d8] sm:$0xf0]  ;;  %v2536_v47 = vor.u32 %v3506_v2, %v2533_v3  ;;  %v2344_v2 = vor.u32 %v3458_v28, %v2341_v29  ;;  %v3163_v28 = vld [vmem:[#allocation4 + $0x2c0] sm:$0xf] }
  0xb9   :  { %v2792_v55 = vor.u32 %v3570_v44, %v2789_v45  ;;  %v2600_v44 = vor.u32 %v3522_v39, %v2597_v40  ;;  %v3411_v29 = vld [vmem:[#allocation4 + $0x2cc] sm:$0xf0]  ;;  %v2891_v39 = vld [vmem:[#allocation4 + $0xa0] sm:$0xf] }
  0xba   :  { %v3343_v40 = vld [vmem:[#allocation4 + $0xac] sm:$0xf0] }
  0xbb   :  { %1121 = vmatpush.bf16.msra.mxu0 %v2340_v56  ;;  %1134 = vmatpush.bf16.msra.mxu1 %v2468_v57  ;;  %v3502_v56 = vld [vmem:[#allocation6 + $0x1ac] sm:$0xf]  ;;  %v2517_v57 = vld [vmem:[#allocation6 + $0x1b8] sm:$0xf0] }
  0xbc   :  { %1147 = vmatpush.bf16.msra.mxu2 %v2596_v60  ;;  %1160 = vmatpush.bf16.msra.mxu3 %v2724_v61  ;;  %v3566_v60 = vld [vmem:[#allocation6 + $0x3ac] sm:$0xf]  ;;  %v2773_v61 = vld [vmem:[#allocation6 + $0x3b8] sm:$0xf0]  ;;  %v2520_v63 = vor.u32 %v3502_v56, %v2517_v57  ;;  %v2328_v57 = vor.u32 %v3454_v42, %v2325_v43  ;;  %v3147_v42 = vld [vmem:[#allocation4 + $0x2a0] sm:$0xf] }
  0xbd   :  { %v2776_v7 = vor.u32 %v3566_v60, %v2773_v61  ;;  %v3450_v56 = vld [vmem:[#allocation6 + $0xc] sm:$0xf]  ;;  %v2437_v61 = vld [vmem:[#allocation6 + $0x118] sm:$0xf0]  ;;  %v3407_v43 = vld [vmem:[#allocation4 + $0x2ac] sm:$0xf0] }
  0xbe   :  { %v3482_v60 = vld [vmem:[#allocation6 + $0x10c] sm:$0xf]  ;;  %v2312_v13 = vor.u32 %v3450_v56, %v2309_v59  ;;  %v3003_v56 = vld [vmem:[#allocation4 + $0x180] sm:$0xf]  ;;  %v3403_v59 = vld [vmem:[#allocation4 + $0x28c] sm:$0xf0] }
  0xbf   :  { %1122 = vmatpush.bf16.msra.mxu0 %v2324_v9  ;;  %1135 = vmatpush.bf16.msra.mxu1 %v2452_v10  ;;  %v2501_v9 = vld [vmem:[#allocation6 + $0x198] sm:$0xf0]  ;;  %v3530_v10 = vld [vmem:[#allocation6 + $0x28c] sm:$0xf] }
  0xc0   :  { %1148 = vmatpush.bf16.msra.mxu2 %v2580_v14  ;;  %1161 = vmatpush.bf16.msra.mxu3 %v2708_v15  ;;  %v2376_v14 = vor.u32 %v3466_v4, %v2373_v5  ;;  %v2504_v15 = vor.u32 %v3498_v8, %v2501_v9  ;;  %v2632_v18 = vor.u32 %v3530_v10, %v2629_v11  ;;  %v3514_v4 = vld [vmem:[#allocation6 + $0x20c] sm:$0xf]  ;;  %v2565_v5 = vld [vmem:[#allocation6 + $0x218] sm:$0xf0]  ;;  %v2923_v8 = vld [vmem:[#allocation4 + $0xe0] sm:$0xf] }
  0xc1   :  { %v3351_v9 = vld [vmem:[#allocation4 + $0xec] sm:$0xf0]  ;;  %v3051_v10 = vld [vmem:[#allocation4 + $0x1e0] sm:$0xf] }
  0xc2   :  { %v3383_v11 = vld [vmem:[#allocation4 + $0x1ec] sm:$0xf0]  ;;  %v3754_v20 = vor.u32 %v3351_v9, %v2923_v8  ;;  %v2987_v8 = vld [vmem:[#allocation4 + $0x160] sm:$0xf] }
  0xc3   :  { %1123 = vmatpush.bf16.msra.mxu0 %v2308_v25  ;;  %1136 = vmatpush.bf16.msra.mxu1 %v2436_v26  ;;  %v2741_v25 = vld [vmem:[#allocation6 + $0x378] sm:$0xf0]  ;;  %v2360_v26 = vor.u32 %v3462_v16, %v2357_v17  ;;  %v3307_v16 = vld [vmem:[#allocation4 + $0x3e0] sm:$0xf]  ;;  %v3447_v17 = vld [vmem:[#allocation4 + $0x3ec] sm:$0xf0]  ;;  %v3756_v21 = vor.u32 %v3383_v11, %v3051_v10 }
  0xc4   :  { %1149 = vmatpush.bf16.msra.mxu2 %v2564_v30  ;;  %1162 = vmatpush.bf16.msra.mxu3 %v2692_v31  ;;  %v2616_v30 = vor.u32 %v3526_v22, %v2613_v23  ;;  %v2744_v31 = vor.u32 %v3558_v24, %v2741_v25  ;;  %v2907_v22 = vld [vmem:[#allocation4 + $0xc0] sm:$0xf]  ;;  %v3347_v23 = vld [vmem:[#allocation4 + $0xcc] sm:$0xf0]  ;;  %v3760_v25 = vor.u32 %v3447_v17, %v3307_v16 }
  0xc5   :  { %v3367_v9 = vld [vmem:[#allocation4 + $0x16c] sm:$0xf0]  ;;  %v3115_v10 = vld [vmem:[#allocation4 + $0x260] sm:$0xf] }
  0xc6   :  { %1124 = vmatmul.bf16.vlgmr.msra.gmra.mxu0 %v3734_v48  ;;  %1137 = vmatmul.bf16.vlgmr.msra.gmra.mxu1 %v3736_v49  ;;  %v3399_v11 = vld [vmem:[#allocation4 + $0x26c] sm:$0xf0]  ;;  %v2843_v16 = vld [vmem:[#allocation4 + $0x40] sm:$0xf] }
  0xc7   :  { %1168 = vmatpush.bf16.msrb.mxu0 %v2424_v36  ;;  %1181 = vmatpush.bf16.msrb.mxu1 %v2552_v0  ;;  %v3490_v36 = vld [vmem:[#allocation6 + $0x14c] sm:$0xf]  ;;  %v2469_v0 = vld [vmem:[#allocation6 + $0x158] sm:$0xf0]  ;;  %v3331_v17 = vld [vmem:[#allocation4 + $0x4c] sm:$0xf0] }
  0xc8   :  { %1194 = vmatpush.bf16.msrb.mxu2 %v2680_v1  ;;  %1207 = vmatpush.bf16.msrb.mxu3 %v2808_v41  ;;  %v3554_v1 = vld [vmem:[#allocation6 + $0x34c] sm:$0xf]  ;;  %v2725_v41 = vld [vmem:[#allocation6 + $0x358] sm:$0xf0]  ;;  %v2472_v3 = vor.u32 %v3490_v36, %v2469_v0  ;;  %v3764_v36 = vor.u32 %v3347_v23, %v2907_v22  ;;  %v2971_v22 = vld [vmem:[#allocation4 + $0x140] sm:$0xf] }
  0xc9   :  { %1150 = vmatmul.bf16.vlgmr.msra.gmra.mxu2 %v3738_v50  ;;  %1163 = vmatmul.bf16.vlgmr.msra.gmra.mxu3 %v3740_v51  ;;  %v2728_v45 = vor.u32 %v3554_v1, %v2725_v41  ;;  %v3770_v1 = vor.u32 %v3411_v29, %v3163_v28  ;;  %v3363_v23 = vld [vmem:[#allocation4 + $0x14c] sm:$0xf0]  ;;  %v3227_v28 = vld [vmem:[#allocation4 + $0x340] sm:$0xf] }
  0xca   :  { %v3427_v29 = vld [vmem:[#allocation4 + $0x34c] sm:$0xf0] }
  0xcb   :  { %1169 = vmatpush.bf16.msrb.mxu0 %v2408_v46  ;;  %1182 = vmatpush.bf16.msrb.mxu1 %v2536_v47  ;;  %v3486_v46 = vld [vmem:[#allocation6 + $0x12c] sm:$0xf]  ;;  %v2453_v47 = vld [vmem:[#allocation6 + $0x138] sm:$0xf0] }
  0xcc   :  { %1195 = vmatpush.bf16.msrb.mxu2 %v2664_v54  ;;  %1208 = vmatpush.bf16.msrb.mxu3 %v2792_v55  ;;  %v3550_v54 = vld [vmem:[#allocation6 + $0x32c] sm:$0xf]  ;;  %v2709_v55 = vld [vmem:[#allocation6 + $0x338] sm:$0xf0]  ;;  %v2456_v58 = vor.u32 %v3486_v46, %v2453_v47  ;;  %v3780_v46 = vor.u32 %v3343_v40, %v2891_v39  ;;  %v2827_v39 = vld [vmem:[#allocation4 + $0x20] sm:$0xf] }
  0xcd   :  { %v3327_v40 = vld [vmem:[#allocation4 + $0x2c] sm:$0xf0] }
  0xcf   :  { %1170 = vmatpush.bf16.msrb.mxu0 %v2392_v62  ;;  %1183 = vmatpush.bf16.msrb.mxu1 %v2520_v63  ;;  %v2584_v62 = vor.u32 %v3518_v52, %v2581_v53  ;;  %v2712_v63 = vor.u32 %v3550_v54, %v2709_v55  ;;  %v2875_v52 = vld [vmem:[#allocation4 + $0x80] sm:$0xf]  ;;  %v3339_v53 = vld [vmem:[#allocation4 + $0x8c] sm:$0xf0]  ;;  %v3786_v54 = vor.u32 %v3407_v43, %v3147_v42 }
  0xd0   :  { %1196 = vmatpush.bf16.msrb.mxu2 %v2648_v6  ;;  %1209 = vmatpush.bf16.msrb.mxu3 %v2776_v7  ;;  %v3546_v6 = vld [vmem:[#allocation6 + $0x30c] sm:$0xf]  ;;  %v2693_v7 = vld [vmem:[#allocation6 + $0x318] sm:$0xf0]  ;;  %v2955_v42 = vld [vmem:[#allocation4 + $0x120] sm:$0xf] }
  0xd1   :  { %v3359_v43 = vld [vmem:[#allocation4 + $0x12c] sm:$0xf0] }
  0xd3   :  { %1171 = vmatpush.bf16.msrb.mxu0 %v2376_v14  ;;  %1184 = vmatpush.bf16.msrb.mxu1 %v2504_v15  ;;  %v2440_v14 = vor.u32 %v3482_v60, %v2437_v61  ;;  %v3415_v15 = vld [vmem:[#allocation4 + $0x2ec] sm:$0xf0]  ;;  %v3259_v60 = vld [vmem:[#allocation4 + $0x380] sm:$0xf] }
  0xd4   :  { %1197 = vmatpush.bf16.msrb.mxu2 %v2632_v18  ;;  %1210 = vmatpush.bf16.msrb.mxu3 %v2760_v19  ;;  %v2568_v18 = vor.u32 %v3514_v4, %v2565_v5  ;;  %v2696_v19 = vor.u32 %v3546_v6, %v2693_v7  ;;  %v3758_v24 = vor.u32 %v3415_v15, %v3179_v12  ;;  %v3435_v61 = vld [vmem:[#allocation4 + $0x38c] sm:$0xf0]  ;;  %v2859_v4 = vld [vmem:[#allocation4 + $0x60] sm:$0xf] }
  0xd5   :  { %v3335_v5 = vld [vmem:[#allocation4 + $0x6c] sm:$0xf0]  ;;  %v3800_v7 = vor.u32 %v3435_v61, %v3259_v60  ;;  %v3243_v12 = vld [vmem:[#allocation4 + $0x360] sm:$0xf]  ;;  %v3806_v15 = vor.u32 %v3367_v9, %v2987_v8 }
  0xd6   :  { %v2939_v60 = vld [vmem:[#allocation4 + $0x100] sm:$0xf]  ;;  %v3355_v61 = vld [vmem:[#allocation4 + $0x10c] sm:$0xf0] }
  0xd7   :  { %1172 = vmatpush.bf16.msrb.mxu0 %v2360_v26  ;;  %1185 = vmatpush.bf16.msrb.mxu1 %v2488_v27  ;;  %v3035_v26 = vld [vmem:[#allocation4 + $0x1c0] sm:$0xf]  ;;  %v3379_v27 = vld [vmem:[#allocation4 + $0x1cc] sm:$0xf0] }
  0xd8   :  { %1198 = vmatpush.bf16.msrb.mxu2 %v2616_v30  ;;  %1211 = vmatpush.bf16.msrb.mxu3 %v2744_v31  ;;  %v3291_v30 = vld [vmem:[#allocation4 + $0x3c0] sm:$0xf]  ;;  %v3443_v31 = vld [vmem:[#allocation4 + $0x3cc] sm:$0xf0]  ;;  %v3766_v0 = vor.u32 %v3379_v27, %v3035_v26 }
  0xd9   :  { %v3772_v41 = vor.u32 %v3443_v31, %v3291_v30  ;;  %v3099_v26 = vld [vmem:[#allocation4 + $0x240] sm:$0xf]  ;;  %v3395_v27 = vld [vmem:[#allocation4 + $0x24c] sm:$0xf0]  ;;  %v3816_v30 = vor.u32 %v3331_v17, %v2843_v16  ;;  %v3818_v31 = vor.u32 %v3363_v23, %v2971_v22  ;;  %v3381_v16 = vld [vmem:[#allocation4 + $0x1e4] sm:$0xf] }
  0xda   :  { %v3067_v8 = vld [vmem:[#allocation4 + $0x200] sm:$0xf]  ;;  %v3387_v9 = vld [vmem:[#allocation4 + $0x20c] sm:$0xf0]  ;;  %v3053_v17 = vld [vmem:[#allocation4 + $0x1f0] sm:$0xf0] }
  0xdb   :  { %1173 = vmatpush.bf16.msrb.mxu0 %v2344_v2  ;;  %1186 = vmatpush.bf16.msrb.mxu1 %v2472_v3  ;;  %v3019_v2 = vld [vmem:[#allocation4 + $0x1a0] sm:$0xf]  ;;  %v3375_v3 = vld [vmem:[#allocation4 + $0x1ac] sm:$0xf0]  ;;  %v3413_v22 = vld [vmem:[#allocation4 + $0x2e4] sm:$0xf] }
  0xdc   :  { %1199 = vmatpush.bf16.msrb.mxu2 %v2600_v44  ;;  %1212 = vmatpush.bf16.msrb.mxu3 %v2728_v45  ;;  %v3275_v44 = vld [vmem:[#allocation4 + $0x3a0] sm:$0xf]  ;;  %v3439_v45 = vld [vmem:[#allocation4 + $0x3ac] sm:$0xf0]  ;;  %v3782_v47 = vor.u32 %v3375_v3, %v3019_v2  ;;  %v3822_v2 = vor.u32 %v3395_v27, %v3099_v26  ;;  %v3824_v3 = vor.u32 %v3427_v29, %v3227_v28  ;;  %v3181_v27 = vld [vmem:[#allocation4 + $0x2f0] sm:$0xf0] }
  0xdd   :  { %v3788_v55 = vor.u32 %v3439_v45, %v3275_v44  ;;  %v3083_v44 = vld [vmem:[#allocation4 + $0x220] sm:$0xf]  ;;  %v3391_v45 = vld [vmem:[#allocation4 + $0x22c] sm:$0xf0]  ;;  %v3842_v26 = vor.u32 %v3355_v61, %v2939_v60  ;;  %v3445_v28 = vld [vmem:[#allocation4 + $0x3e4] sm:$0xf] }
  0xde   :  { %v3309_v29 = vld [vmem:[#allocation4 + $0x3f0] sm:$0xf0]  ;;  %v3409_v60 = vld [vmem:[#allocation4 + $0x2c4] sm:$0xf] }
  0xdf   :  { %1174 = vmatpush.bf16.msrb.mxu0 %v2328_v57  ;;  %1187 = vmatpush.bf16.msrb.mxu1 %v2456_v58  ;;  %v3371_v57 = vld [vmem:[#allocation4 + $0x18c] sm:$0xf0]  ;;  %v3131_v58 = vld [vmem:[#allocation4 + $0x280] sm:$0xf]  ;;  %4445 = vst [vmem:[#allocation13_spill] sm:$0xff] %v3842_v26 }
  0xe0   :  { %1200 = vmatpush.bf16.msrb.mxu2 %v2584_v62  ;;  %1213 = vmatpush.bf16.msrb.mxu3 %v2712_v63  ;;  %v3792_v62 = vor.u32 %v3339_v53, %v2875_v52  ;;  %v3794_v63 = vor.u32 %v3371_v57, %v3003_v56  ;;  %v3798_v6 = vor.u32 %v3403_v59, %v3131_v58  ;;  %v3211_v52 = vld [vmem:[#allocation4 + $0x320] sm:$0xf]  ;;  %v3423_v53 = vld [vmem:[#allocation4 + $0x32c] sm:$0xf0]  ;;  %v3165_v61 = vld [vmem:[#allocation4 + $0x2d0] sm:$0xf0] }
  0xe1   :  { %v2811_v56 = vld [vmem:[#allocation4] sm:$0xf]  ;;  %v3828_v57 = vor.u32 %v3327_v40, %v2827_v39  ;;  %v3830_v58 = vor.u32 %v3359_v43, %v2955_v42  ;;  %v3323_v59 = vld [vmem:[#allocation4 + $0xc] sm:$0xf0]  ;;  %v3846_v39 = vor.u32 %v3387_v9, %v3067_v8  ;;  %v3852_v43 = vor.u32 %v3381_v16, %v3053_v17  ;;  %v3441_v8 = vld [vmem:[#allocation4 + $0x3c4] sm:$0xf] }
  0xe2   :  { %v3840_v23 = vor.u32 %v3323_v59, %v2811_v56  ;;  %v3377_v56 = vld [vmem:[#allocation4 + $0x1c4] sm:$0xf]  ;;  %v3037_v59 = vld [vmem:[#allocation4 + $0x1d0] sm:$0xf0]  ;;  %v3870_v16 = vor.u32 %v3409_v60, %v3165_v61 }
  0xe3   :  { %1175 = vmatpush.bf16.msrb.mxu0 %v2312_v13  ;;  %1188 = vmatpush.bf16.msrb.mxu1 %v2440_v14  ;;  %v3431_v13 = vld [vmem:[#allocation4 + $0x36c] sm:$0xf0]  ;;  %v3804_v14 = vor.u32 %v3335_v5, %v2859_v4  ;;  %v3834_v4 = vor.u32 %v3391_v45, %v3083_v44  ;;  %v3836_v5 = vor.u32 %v3423_v53, %v3211_v52  ;;  %v3345_v44 = vld [vmem:[#allocation4 + $0xc4] sm:$0xf]  ;;  %v2909_v45 = vld [vmem:[#allocation4 + $0xd0] sm:$0xf0] }
  0xe4   :  { %1201 = vmatpush.bf16.msrb.mxu2 %v2568_v18  ;;  %1214 = vmatpush.bf16.msrb.mxu3 %v2696_v19  ;;  %v3810_v18 = vor.u32 %v3399_v11, %v3115_v10  ;;  %v3812_v19 = vor.u32 %v3431_v13, %v3243_v12  ;;  %v3195_v10 = vld [vmem:[#allocation4 + $0x300] sm:$0xf]  ;;  %v3419_v11 = vld [vmem:[#allocation4 + $0x30c] sm:$0xf0]  ;;  %v3349_v12 = vld [vmem:[#allocation4 + $0xe4] sm:$0xf]  ;;  %v3854_v52 = vor.u32 %v3413_v22, %v3181_v27 }
  0xe5   :  { %v2925_v13 = vld [vmem:[#allocation4 + $0xf0] sm:$0xf0]  ;;  %4444 = vst [vmem:[#allocation12_spill] sm:$0xff] %v3840_v23  ;;  %v3848_v40 = vor.u32 %v3419_v11, %v3195_v10  ;;  %v3856_v53 = vor.u32 %v3445_v28, %v3309_v29  ;;  %v3864_v10 = vor.u32 %v3345_v44, %v2909_v45  ;;  %v3866_v11 = vor.u32 %v3377_v56, %v3037_v59  ;;  %v3373_v22 = vld [vmem:[#allocation4 + $0x1a4] sm:$0xf] }
  0xe6   :  { %1176 = vmatmul.bf16.vlgmr.msrb.gmra.mxu0 %v3734_v48  ;;  %1189 = vmatmul.bf16.vlgmr.msrb.gmra.mxu1 %v3736_v49  ;;  %4446 = vst [vmem:[#allocation14_spill] sm:$0xff] %v3846_v39  ;;  %v3850_v42 = vor.u32 %v3349_v12, %v2925_v13  ;;  %v3293_v9 = vld [vmem:[#allocation4 + $0x3d0] sm:$0xf0]  ;;  %v3341_v12 = vld [vmem:[#allocation4 + $0xa4] sm:$0xf] }
  0xe7   :  { %1860 = vmatpush.bf16.msra.mxu0 %v3754_v20  ;;  %1873 = vmatpush.bf16.msra.mxu1 %v3756_v21  ;;  %4447 = vst [vmem:[#allocation15_spill] sm:$0xff] %v3848_v40  ;;  %v2893_v13 = vld [vmem:[#allocation4 + $0xb0] sm:$0xf0]  ;;  %v3872_v17 = vor.u32 %v3441_v8, %v3293_v9  ;;  %v3405_v28 = vld [vmem:[#allocation4 + $0x2a4] sm:$0xf] }
  0xe8   :  { %1886 = vmatpush.bf16.msra.mxu2 %v3758_v24  ;;  %1899 = vmatpush.bf16.msra.mxu3 %v3760_v25  ;;  %4448 = vst [vmem:[#allocation16_spill] sm:$0xff] %v3850_v42  ;;  %v3021_v27 = vld [vmem:[#allocation4 + $0x1b0] sm:$0xf0]  ;;  %v3437_v44 = vld [vmem:[#allocation4 + $0x3a4] sm:$0xf]  ;;  %v3880_v56 = vor.u32 %v3341_v12, %v2893_v13 }
  0xe9   :  { %1202 = vmatmul.bf16.vlgmr.msrb.gmra.mxu2 %v3738_v50  ;;  %1215 = vmatmul.bf16.vlgmr.msrb.gmra.mxu3 %v3740_v51  ;;  %4449 = vst [vmem:[#allocation17_spill] sm:$0xff] %v3852_v43  ;;  %v3149_v29 = vld [vmem:[#allocation4 + $0x2b0] sm:$0xf0]  ;;  %v3882_v59 = vor.u32 %v3373_v22, %v3021_v27  ;;  %v3337_v60 = vld [vmem:[#allocation4 + $0x84] sm:$0xf] }
  0xea   :  { %4450 = vst [vmem:[#allocation18_spill] sm:$0xff] %v3854_v52  ;;  %v3277_v45 = vld [vmem:[#allocation4 + $0x3b0] sm:$0xf0]  ;;  %v3886_v8 = vor.u32 %v3405_v28, %v3149_v29  ;;  %v3333_v22 = vld [vmem:[#allocation4 + $0x64] sm:$0xf] }
  0xeb   :  { %1861 = vmatpush.bf16.msra.mxu0 %v3764_v36  ;;  %1874 = vmatpush.bf16.msra.mxu1 %v3766_v0  ;;  %4451 = vst [vmem:[#allocation19_spill] sm:$0xff] %v3856_v53  ;;  %v2877_v61 = vld [vmem:[#allocation4 + $0x90] sm:$0xf0]  ;;  %v3888_v9 = vor.u32 %v3437_v44, %v3277_v45  ;;  %v3365_v44 = vld [vmem:[#allocation4 + $0x164] sm:$0xf] }
  0xec   :  { %1887 = vmatpush.bf16.msra.mxu2 %v3770_v1  ;;  %1900 = vmatpush.bf16.msra.mxu3 %v3772_v41  ;;  %4452 = vst [vmem:[#allocation20_spill] sm:$0xff] %v3864_v10  ;;  %v3892_v12 = vor.u32 %v3337_v60, %v2877_v61  ;;  %v2861_v27 = vld [vmem:[#allocation4 + $0x70] sm:$0xf0]  ;;  %v3329_v60 = vld [vmem:[#allocation4 + $0x44] sm:$0xf] }
  0xed   :  { %4453 = vst [vmem:[#allocation21_spill] sm:$0xff] %v3866_v11  ;;  %v2989_v45 = vld [vmem:[#allocation4 + $0x170] sm:$0xf0] }
  0xee   :  { %4454 = vst [vmem:[#allocation22_spill] sm:$0xff] %v3870_v16  ;;  %v2845_v61 = vld [vmem:[#allocation4 + $0x50] sm:$0xf0] }
  0xef   :  { %1862 = vmatpush.bf16.msra.mxu0 %v3780_v46  ;;  %1875 = vmatpush.bf16.msra.mxu1 %v3782_v47  ;;  %4455 = vst [vmem:[#allocation23_spill] sm:$0xff] %v3872_v17 }
  0xf0   :  { %1888 = vmatpush.bf16.msra.mxu2 %v3786_v54  ;;  %1901 = vmatpush.bf16.msra.mxu3 %v3788_v55  ;;  %4456 = vst [vmem:[#allocation24_spill] sm:$0xff] %v3880_v56 }
  0xf1   :  { %4457 = vst [vmem:[#allocation25_spill] sm:$0xff] %v3882_v59 }
  0xf2   :  { %4458 = vst [vmem:[#allocation26_spill] sm:$0xff] %v3886_v8 }
  0xf3   :  { %1863 = vmatpush.bf16.msra.mxu0 %v3792_v62  ;;  %1876 = vmatpush.bf16.msra.mxu1 %v3794_v63  ;;  %4459 = vst [vmem:[#allocation27_spill] sm:$0xff] %v3888_v9 }
  0xf4   :  { %1889 = vmatpush.bf16.msra.mxu2 %v3798_v6  ;;  %1902 = vmatpush.bf16.msra.mxu3 %v3800_v7  ;;  %4460 = vst [vmem:[#allocation28_spill] sm:$0xff] %v3892_v12 }
  0xf7   :  { %1864 = vmatpush.bf16.msra.mxu0 %v3804_v14  ;;  %1877 = vmatpush.bf16.msra.mxu1 %v3806_v15 }
  0xf8   :  { %1890 = vmatpush.bf16.msra.mxu2 %v3810_v18  ;;  %1903 = vmatpush.bf16.msra.mxu3 %v3812_v19 }
  0xfb   :  { %1865 = vmatpush.bf16.msra.mxu0 %v3816_v30  ;;  %1878 = vmatpush.bf16.msra.mxu1 %v3818_v31 }
  0xfc   :  { %1891 = vmatpush.bf16.msra.mxu2 %v3822_v2  ;;  %1904 = vmatpush.bf16.msra.mxu3 %v3824_v3 }
  0xff   :  { %1866 = vmatpush.bf16.msra.mxu0 %v3828_v57  ;;  %1879 = vmatpush.bf16.msra.mxu1 %v3830_v58 }
 0x100   :  { %1892 = vmatpush.bf16.msra.mxu2 %v3834_v4  ;;  %1905 = vmatpush.bf16.msra.mxu3 %v3836_v5 }
 0x103   :  { %1867 = vmatpush.bf16.msra.mxu0 %v3840_v23  ;;  %1880 = vmatpush.bf16.msra.mxu1 %v3842_v26  ;;  %v3380_v23 = vld [vmem:[#allocation4 + $0x1d4] sm:$0xf0] }
 0x104   :  { %1893 = vmatpush.bf16.msra.mxu2 %v3846_v39  ;;  %1906 = vmatpush.bf16.msra.mxu3 %v3848_v40  ;;  %v3197_v40 = vld [vmem:[#allocation4 + $0x310] sm:$0xf0] }
 0x106   :  { %1868 = vmatmul.bf16.vlgmr.msra.gmra.mxu0 %v3734_v48  ;;  %1881 = vmatmul.bf16.vlgmr.msra.gmra.mxu1 %v3736_v49 }
 0x107   :  { %1912 = vmatpush.bf16.msrb.mxu0 %v3850_v42  ;;  %1925 = vmatpush.bf16.msrb.mxu1 %v3852_v43  ;;  %v3401_v43 = vld [vmem:[#allocation4 + $0x284] sm:$0xf] }
 0x108   :  { %1938 = vmatpush.bf16.msrb.mxu2 %v3854_v52  ;;  %1951 = vmatpush.bf16.msrb.mxu3 %v3856_v53  ;;  %v3369_v53 = vld [vmem:[#allocation4 + $0x184] sm:$0xf]  ;;  %v3005_v52 = vld [vmem:[#allocation4 + $0x190] sm:$0xf0] }
 0x109   :  { %1894 = vmatmul.bf16.vlgmr.msra.gmra.mxu2 %v3738_v50  ;;  %1907 = vmatmul.bf16.vlgmr.msra.gmra.mxu3 %v3740_v51  ;;  %v3433_v42 = vld [vmem:[#allocation4 + $0x384] sm:$0xf]  ;;  %v3894_v13 = vor.u32 %v3369_v53, %v3005_v52  ;;  %v3904_v52 = vor.u32 %v3333_v22, %v2861_v27  ;;  %v3906_v53 = vor.u32 %v3365_v44, %v2989_v45  ;;  %v2829_v45 = vld [vmem:[#allocation4 + $0x30] sm:$0xf0] }
 0x10a   :  { %v3916_v22 = vor.u32 %v3329_v60, %v2845_v61  ;;  %v3325_v44 = vld [vmem:[#allocation4 + $0x24] sm:$0xf] }
 0x10b   :  { %1913 = vmatpush.bf16.msrb.mxu0 %v3864_v10  ;;  %1926 = vmatpush.bf16.msrb.mxu1 %v3866_v11  ;;  %v3133_v10 = vld [vmem:[#allocation4 + $0x290] sm:$0xf0]  ;;  %4461 = vst [vmem:[#allocation29_spill] sm:$0xff] %v3894_v13  ;;  %v3321_v60 = vld [vmem:[#allocation4 + $0x4] sm:$0xf]  ;;  %v3928_v61 = vor.u32 %v3325_v44, %v2829_v45 }
 0x10c   :  { %1939 = vmatpush.bf16.msrb.mxu2 %v3870_v16  ;;  %1952 = vmatpush.bf16.msrb.mxu3 %v3872_v17  ;;  %v3261_v11 = vld [vmem:[#allocation4 + $0x390] sm:$0xf0]  ;;  %v3898_v28 = vor.u32 %v3401_v43, %v3133_v10  ;;  %v3397_v17 = vld [vmem:[#allocation4 + $0x264] sm:$0xf]  ;;  %4464 = vst [vmem:[#allocation32_spill] sm:$0xff] %v3904_v52 }
 0x10d   :  { %v3900_v29 = vor.u32 %v3433_v42, %v3261_v11  ;;  %v3429_v16 = vld [vmem:[#allocation4 + $0x364] sm:$0xf]  ;;  %4465 = vst [vmem:[#allocation33_spill] sm:$0xff] %v3906_v53  ;;  %v2973_v11 = vld [vmem:[#allocation4 + $0x150] sm:$0xf0] }
 0x10e   :  { %4462 = vst [vmem:[#allocation30_spill] sm:$0xff] %v3898_v28  ;;  %v3361_v10 = vld [vmem:[#allocation4 + $0x144] sm:$0xf]  ;;  %v3352_v44 = vld [vmem:[#allocation4 + $0xf4] sm:$0xf0] }
 0x10f   :  { %1914 = vmatpush.bf16.msrb.mxu0 %v3880_v56  ;;  %1927 = vmatpush.bf16.msrb.mxu1 %v3882_v59  ;;  %4463 = vst [vmem:[#allocation31_spill] sm:$0xff] %v3900_v29  ;;  %v3117_v56 = vld [vmem:[#allocation4 + $0x270] sm:$0xf0]  ;;  %v3918_v27 = vor.u32 %v3361_v10, %v2973_v11  ;;  %v3059_v45 = vld [vmem:[#allocation4 + $0x1e8] sm:$0xf] }
 0x110   :  { %1940 = vmatpush.bf16.msrb.mxu2 %v3886_v8  ;;  %1953 = vmatpush.bf16.msrb.mxu3 %v3888_v9  ;;  %v3245_v59 = vld [vmem:[#allocation4 + $0x370] sm:$0xf0]  ;;  %v3910_v42 = vor.u32 %v3397_v17, %v3117_v56  ;;  %v3393_v9 = vld [vmem:[#allocation4 + $0x244] sm:$0xf]  ;;  %4468 = vst [vmem:[#allocation36_spill] sm:$0xff] %v3916_v22 }
 0x111   :  { %v3912_v43 = vor.u32 %v3429_v16, %v3245_v59  ;;  %v3425_v8 = vld [vmem:[#allocation4 + $0x344] sm:$0xf]  ;;  %4469 = vst [vmem:[#allocation37_spill] sm:$0xff] %v3918_v27  ;;  %v2957_v59 = vld [vmem:[#allocation4 + $0x130] sm:$0xf0] }
 0x112   :  { %4466 = vst [vmem:[#allocation34_spill] sm:$0xff] %v3910_v42  ;;  %v3357_v56 = vld [vmem:[#allocation4 + $0x124] sm:$0xf]  ;;  %v2813_v11 = vld [vmem:[#allocation4 + $0x10] sm:$0xf0] }
 0x113   :  { %1915 = vmatpush.bf16.msrb.mxu0 %v3892_v12  ;;  %1928 = vmatpush.bf16.msrb.mxu1 %v3894_v13  ;;  %4467 = vst [vmem:[#allocation35_spill] sm:$0xff] %v3912_v43  ;;  %v3101_v12 = vld [vmem:[#allocation4 + $0x250] sm:$0xf0]  ;;  %v3930_v10 = vor.u32 %v3357_v56, %v2957_v59  ;;  %v3384_v56 = vld [vmem:[#allocation4 + $0x1f4] sm:$0xf0] }
 0x114   :  { %1941 = vmatpush.bf16.msrb.mxu2 %v3898_v28  ;;  %1954 = vmatpush.bf16.msrb.mxu3 %v3900_v29  ;;  %v3229_v13 = vld [vmem:[#allocation4 + $0x350] sm:$0xf0]  ;;  %v3922_v16 = vor.u32 %v3393_v9, %v3101_v12  ;;  %v3389_v29 = vld [vmem:[#allocation4 + $0x224] sm:$0xf]  ;;  %4472 = vst [vmem:[#allocation40_spill] sm:$0xff] %v3928_v61 }
 0x115   :  { %v3924_v17 = vor.u32 %v3425_v8, %v3229_v13  ;;  %v3421_v28 = vld [vmem:[#allocation4 + $0x324] sm:$0xf]  ;;  %4473 = vst [vmem:[#allocation41_spill] sm:$0xff] %v3930_v10  ;;  %v2941_v12 = vld [vmem:[#allocation4 + $0x110] sm:$0xf0] }
 0x116   :  { %4470 = vst [vmem:[#allocation38_spill] sm:$0xff] %v3922_v16  ;;  %v3353_v9 = vld [vmem:[#allocation4 + $0x104] sm:$0xf]  ;;  %v3187_v59 = vld [vmem:[#allocation4 + $0x2e8] sm:$0xf] }
 0x117   :  { %1916 = vmatpush.bf16.msrb.mxu0 %v3904_v52  ;;  %1929 = vmatpush.bf16.msrb.mxu1 %v3906_v53  ;;  %4471 = vst [vmem:[#allocation39_spill] sm:$0xff] %v3924_v17  ;;  %v3085_v52 = vld [vmem:[#allocation4 + $0x230] sm:$0xf0] }
 0x118   :  { %1942 = vmatpush.bf16.msrb.mxu2 %v3910_v42  ;;  %1955 = vmatpush.bf16.msrb.mxu3 %v3912_v43  ;;  %v3213_v53 = vld [vmem:[#allocation4 + $0x330] sm:$0xf0]  ;;  %v3934_v8 = vor.u32 %v3389_v29, %v3085_v52  ;;  %v3385_v43 = vld [vmem:[#allocation4 + $0x204] sm:$0xf]  ;;  %v3416_v29 = vld [vmem:[#allocation4 + $0x2f4] sm:$0xf0] }
 0x119   :  { %v3936_v13 = vor.u32 %v3421_v28, %v3213_v53  ;;  %v3069_v42 = vld [vmem:[#allocation4 + $0x210] sm:$0xf0]  ;;  %v3315_v28 = vld [vmem:[#allocation4 + $0x3e8] sm:$0xf]  ;;  %v3448_v52 = vld [vmem:[#allocation4 + $0x3f4] sm:$0xf0] }
 0x11a   :  { %4474 = vst [vmem:[#allocation42_spill] sm:$0xff] %v3934_v8  ;;  %v3946_v53 = vor.u32 %v3385_v43, %v3069_v42  ;;  %v3412_v42 = vld [vmem:[#allocation4 + $0x2d4] sm:$0xf0] }
 0x11b   :  { %1917 = vmatpush.bf16.msrb.mxu0 %v3916_v22  ;;  %1930 = vmatpush.bf16.msrb.mxu1 %v3918_v27  ;;  %4475 = vst [vmem:[#allocation43_spill] sm:$0xff] %v3936_v13  ;;  %v3417_v22 = vld [vmem:[#allocation4 + $0x304] sm:$0xf]  ;;  %v2931_v27 = vld [vmem:[#allocation4 + $0xe8] sm:$0xf] }
 0x11c   :  { %1943 = vmatpush.bf16.msrb.mxu2 %v3922_v16  ;;  %1956 = vmatpush.bf16.msrb.mxu3 %v3924_v17  ;;  %v3940_v16 = vor.u32 %v3321_v60, %v2813_v11  ;;  %v3942_v17 = vor.u32 %v3353_v9, %v2941_v12  ;;  %4478 = vst [vmem:[#allocation46_spill] sm:$0xff] %v3946_v53  ;;  %v3348_v60 = vld [vmem:[#allocation4 + $0xd4] sm:$0xf0]  ;;  %v3043_v12 = vld [vmem:[#allocation4 + $0x1c8] sm:$0xf] }
 0x11d   :  { %v3948_v39 = vor.u32 %v3417_v22, %v3197_v40  ;;  %v3950_v26 = vor.u32 %v3352_v44, %v2931_v27  ;;  %v3954_v11 = vor.u32 %v3416_v29, %v3187_v59  ;;  %v3956_v9 = vor.u32 %v3448_v52, %v3315_v28  ;;  %v3299_v40 = vld [vmem:[#allocation4 + $0x3c8] sm:$0xf]  ;;  %v3444_v43 = vld [vmem:[#allocation4 + $0x3d4] sm:$0xf0] }
 0x11e   :  { %4476 = vst [vmem:[#allocation44_spill] sm:$0xff] %v3940_v16  ;;  %v3966_v27 = vor.u32 %v3380_v23, %v3043_v12  ;;  %v2899_v44 = vld [vmem:[#allocation4 + $0xa8] sm:$0xf]  ;;  %v3972_v59 = vor.u32 %v3444_v43, %v3299_v40  ;;  %v3376_v28 = vld [vmem:[#allocation4 + $0x1b4] sm:$0xf0] }
 0x11f   :  { %1918 = vmatpush.bf16.msrb.mxu0 %v3928_v61  ;;  %1931 = vmatpush.bf16.msrb.mxu1 %v3930_v10  ;;  %4477 = vst [vmem:[#allocation45_spill] sm:$0xff] %v3942_v17  ;;  %v3952_v61 = vor.u32 %v3384_v56, %v3059_v45  ;;  %v2915_v10 = vld [vmem:[#allocation4 + $0xc8] sm:$0xf]  ;;  %v3344_v45 = vld [vmem:[#allocation4 + $0xb4] sm:$0xf0]  ;;  %v3970_v56 = vor.u32 %v3412_v42, %v3171_v35 }
 0x120   :  { %1944 = vmatpush.bf16.msrb.mxu2 %v3934_v8  ;;  %1957 = vmatpush.bf16.msrb.mxu3 %v3936_v13  ;;  %4479 = vst [vmem:[#allocation47_spill] sm:$0xff] %v3948_v39  ;;  %v3964_v22 = vor.u32 %v3348_v60, %v2915_v10  ;;  %v3027_v29 = vld [vmem:[#allocation4 + $0x1a8] sm:$0xf]  ;;  %v3408_v10 = vld [vmem:[#allocation4 + $0x2b4] sm:$0xf0]  ;;  %v3980_v35 = vor.u32 %v3344_v45, %v2899_v44 }
 0x121   :  { %4480 = vst [vmem:[#allocation48_spill] sm:$0xff] %v3950_v26  ;;  %v3155_v52 = vld [vmem:[#allocation4 + $0x2a8] sm:$0xf]  ;;  %v3440_v60 = vld [vmem:[#allocation4 + $0x3b4] sm:$0xf0]  ;;  %v3982_v42 = vor.u32 %v3376_v28, %v3027_v29 }
 0x122   :  { %4481 = vst [vmem:[#allocation49_spill] sm:$0xff] %v3952_v61  ;;  %v3283_v23 = vld [vmem:[#allocation4 + $0x3a8] sm:$0xf]  ;;  %v1021_v12 = vpop.f32.mrf.mxu0  ;;  %v3436_v44 = vld [vmem:[#allocation4 + $0x394] sm:$0xf0] }
 0x123   :  { %4482 = vst [vmem:[#allocation50_spill] sm:$0xff] %v3954_v11  ;;  %1919 = vmatpush.bf16.msrb.mxu0 %v3940_v16  ;;  %1932 = vmatpush.bf16.msrb.mxu1 %v3942_v17  ;;  %v2883_v43 = vld [vmem:[#allocation4 + $0x88] sm:$0xf]  ;;  %v3404_v17 = vld [vmem:[#allocation4 + $0x294] sm:$0xf0] }
 0x124   :  { %4483 = vst [vmem:[#allocation51_spill] sm:$0xff] %v3956_v9  ;;  %1945 = vmatpush.bf16.msrb.mxu2 %v3946_v53  ;;  %1958 = vmatpush.bf16.msrb.mxu3 %v3948_v39  ;;  %v3011_v39 = vld [vmem:[#allocation4 + $0x188] sm:$0xf]  ;;  %v3372_v53 = vld [vmem:[#allocation4 + $0x194] sm:$0xf0] }
 0x125   :  { %4484 = vst [vmem:[#allocation52_spill] sm:$0xff] %v3964_v22  ;;  %v3994_v45 = vor.u32 %v3372_v53, %v3011_v39  ;;  %v2867_v29 = vld [vmem:[#allocation4 + $0x68] sm:$0xf]  ;;  %v3336_v28 = vld [vmem:[#allocation4 + $0x74] sm:$0xf0] }
 0x126   :  { %4485 = vst [vmem:[#allocation53_spill] sm:$0xff] %v3966_v27  ;;  %1920 = vmatmul.bf16.vlgmr.msrb.gmra.mxu0 %v3734_v48  ;;  %1933 = vmatmul.bf16.vlgmr.msrb.gmra.mxu1 %v3736_v49  ;;  %v3075_v16 = vld [vmem:[#allocation4 + $0x208] sm:$0xf] }
 0x127   :  { %1964 = vmatpush.bf16.msra.mxu0 %v3950_v26  ;;  %1977 = vmatpush.bf16.msra.mxu1 %v3952_v61  ;;  %4486 = vst [vmem:[#allocation54_spill] sm:$0xff] %v3970_v56  ;;  %v3986_v61 = vor.u32 %v3408_v10, %v3155_v52  ;;  %v3988_v26 = vor.u32 %v3440_v60, %v3283_v23  ;;  %v2995_v23 = vld [vmem:[#allocation4 + $0x168] sm:$0xf]  ;;  %v3368_v60 = vld [vmem:[#allocation4 + $0x174] sm:$0xf0] }
 0x128   :  { %1990 = vmatpush.bf16.msra.mxu2 %v3954_v11  ;;  %2003 = vmatpush.bf16.msra.mxu3 %v3956_v9  ;;  %4487 = vst [vmem:[#allocation55_spill] sm:$0xff] %v3972_v59  ;;  %v1034_v9 = vpop.f32.mrf.mxu1  ;;  %v3340_v11 = vld [vmem:[#allocation4 + $0x94] sm:$0xf0]  ;;  %v3203_v13 = vld [vmem:[#allocation4 + $0x308] sm:$0xf] }
 0x129   :  { %1946 = vmatmul.bf16.vlgmr.msrb.gmra.mxu2 %v3738_v50  ;;  %1959 = vmatmul.bf16.vlgmr.msrb.gmra.mxu3 %v3740_v51  ;;  %4488 = vst [vmem:[#allocation56_spill] sm:$0xff] %v3980_v35  ;;  %v1035_v40 = vadd.f32 %v1034_v9, %v1021_v12  ;;  %v3992_v9 = vor.u32 %v3340_v11, %v2883_v43  ;;  %v3123_v12 = vld [vmem:[#allocation4 + $0x268] sm:$0xf]  ;;  %v3432_v43 = vld [vmem:[#allocation4 + $0x374] sm:$0xf0] }
 0x12a   :  { %4489 = vst [vmem:[#allocation57_spill] sm:$0xff] %v3982_v42  ;;  %v3251_v11 = vld [vmem:[#allocation4 + $0x368] sm:$0xf]  ;;  %v1023_v53 = vpop.f32.mrf.mxu0 }
 0x12b   :  { %1965 = vmatpush.bf16.msra.mxu0 %v3964_v22  ;;  %1978 = vmatpush.bf16.msra.mxu1 %v3966_v27  ;;  %4490 = vst [vmem:[#allocation58_spill] sm:$0xff] %v3986_v61  ;;  %v3139_v22 = vld [vmem:[#allocation4 + $0x288] sm:$0xf] }
 0x12c   :  { %1991 = vmatpush.bf16.msra.mxu2 %v3970_v56  ;;  %2004 = vmatpush.bf16.msra.mxu3 %v3972_v59  ;;  %4491 = vst [vmem:[#allocation59_spill] sm:$0xff] %v3988_v26  ;;  %v3267_v27 = vld [vmem:[#allocation4 + $0x388] sm:$0xf]  ;;  %v3998_v52 = vor.u32 %v3404_v17, %v3139_v22  ;;  %v1060_v59 = vpop.f32.mrf.mxu3  ;;  %v4006_v17 = vor.u32 %v3368_v60, %v2995_v23 }
 0x12d   :  { %4492 = vst [vmem:[#allocation60_spill] sm:$0xff] %v3992_v9  ;;  %v4000_v10 = vor.u32 %v3436_v44, %v3267_v27  ;;  %v2851_v22 = vld [vmem:[#allocation4 + $0x48] sm:$0xf]  ;;  %v3332_v27 = vld [vmem:[#allocation4 + $0x54] sm:$0xf0] }
 0x12e   :  { %4493 = vst [vmem:[#allocation61_spill] sm:$0xff] %v3994_v45  ;;  %v3107_v53 = vld [vmem:[#allocation4 + $0x248] sm:$0xf]  ;;  %v4018_v23 = vor.u32 %v3332_v27, %v2851_v22  ;;  %v3424_v27 = vld [vmem:[#allocation4 + $0x334] sm:$0xf0] }
 0x12f   :  { %1966 = vmatpush.bf16.msra.mxu0 %v3980_v35  ;;  %1979 = vmatpush.bf16.msra.mxu1 %v3982_v42  ;;  %4494 = vst [vmem:[#allocation62_spill] sm:$0xff] %v3998_v52  ;;  %v1047_v35 = vpop.f32.mrf.mxu2  ;;  %v3400_v42 = vld [vmem:[#allocation4 + $0x274] sm:$0xf0]  ;;  %v3219_v22 = vld [vmem:[#allocation4 + $0x328] sm:$0xf] }
 0x130   :  { %1992 = vmatpush.bf16.msra.mxu2 %v3986_v61  ;;  %2005 = vmatpush.bf16.msra.mxu3 %v3988_v26  ;;  %4495 = vst [vmem:[#allocation63_spill] sm:$0xff] %v4000_v10  ;;  %v1048_v39 = vadd.f32 %v1047_v35, %v1035_v40  ;;  %v1036_v56 = vpop.f32.mrf.mxu1  ;;  %v4004_v26 = vor.u32 %v3336_v28, %v2867_v29  ;;  %v3364_v40 = vld [vmem:[#allocation4 + $0x154] sm:$0xf0]  ;;  %v3235_v29 = vld [vmem:[#allocation4 + $0x348] sm:$0xf] }
 0x131   :  { %4497 = vst [vmem:[#allocation65_spill] sm:$0xff] %v4006_v17  ;;  %v4012_v61 = vor.u32 %v3400_v42, %v3123_v12  ;;  %v4014_v35 = vor.u32 %v3432_v43, %v3251_v11  ;;  %v2979_v56 = vld [vmem:[#allocation4 + $0x148] sm:$0xf]  ;;  %v3428_v28 = vld [vmem:[#allocation4 + $0x354] sm:$0xf0] }
 0x132   :  { %4496 = vst [vmem:[#allocation64_spill] sm:$0xff] %v4004_v26  ;;  %v4010_v44 = vadd.f32 %v1060_v59, %v1048_v39  ;;  %v4020_v60 = vor.u32 %v3364_v40, %v2979_v56  ;;  %v2835_v59 = vld [vmem:[#allocation4 + $0x28] sm:$0xf]  ;;  %v3328_v39 = vld [vmem:[#allocation4 + $0x34] sm:$0xf0]  ;;  %v4026_v12 = vor.u32 %v3428_v28, %v3235_v29  ;;  %v1073_v56 = vpop.f32.mrf.mxu0 }
 0x133   :  { %1967 = vmatpush.bf16.msra.mxu0 %v3992_v9  ;;  %1980 = vmatpush.bf16.msra.mxu1 %v3994_v45  ;;  %4499 = vst [vmem:[#allocation67_spill] sm:$0xff] %v4012_v61  ;;  %v3396_v45 = vld [vmem:[#allocation4 + $0x254] sm:$0xf0]  ;;  %v2963_v11 = vld [vmem:[#allocation4 + $0x128] sm:$0xf] }
 0x134   :  { %1993 = vmatpush.bf16.msra.mxu2 %v3998_v52  ;;  %2006 = vmatpush.bf16.msra.mxu3 %v4000_v10  ;;  %4498 = vst [vmem:[#allocation66_spill] sm:$0xff] %v4010_v44  ;;  %v4024_v42 = vor.u32 %v3396_v45, %v3107_v53  ;;  %v3360_v43 = vld [vmem:[#allocation4 + $0x134] sm:$0xf0]  ;;  %v3091_v10 = vld [vmem:[#allocation4 + $0x228] sm:$0xf]  ;;  %v1062_v52 = vpop.f32.mrf.mxu3 }
 0x135   :  { %4500 = vst [vmem:[#allocation68_spill] sm:$0xff] %v4014_v35  ;;  %v2819_v9 = vld [vmem:[#allocation4 + $0x8] sm:$0xf]  ;;  %v4032_v45 = vor.u32 %v3360_v43, %v2963_v11  ;;  %v3324_v29 = vld [vmem:[#allocation4 + $0x14] sm:$0xf0]  ;;  %v4038_v52 = vor.u32 %v3424_v27, %v3219_v22 }
 0x136   :  { %4501 = vst [vmem:[#allocation69_spill] sm:$0xff] %v4018_v23  ;;  %v2947_v28 = vld [vmem:[#allocation4 + $0x108] sm:$0xf]  ;;  %v3382_v11 = vld [vmem:[#allocation4 + $0x1ec] sm:$0xf] }
 0x137   :  { %1968 = vmatpush.bf16.msra.mxu0 %v4004_v26  ;;  %1981 = vmatpush.bf16.msra.mxu1 %v4006_v17  ;;  %4502 = vst [vmem:[#allocation70_spill] sm:$0xff] %v4020_v60  ;;  %v1049_v26 = vpop.f32.mrf.mxu2  ;;  %v3392_v17 = vld [vmem:[#allocation4 + $0x234] sm:$0xf0]  ;;  %v3061_v43 = vld [vmem:[#allocation4 + $0x1f8] sm:$0xf0] }
 0x138   :  { %1994 = vmatpush.bf16.msra.mxu2 %v4012_v61  ;;  %2007 = vmatpush.bf16.msra.mxu3 %v4014_v35  ;;  %4503 = vst [vmem:[#allocation71_spill] sm:$0xff] %v4024_v42  ;;  %v1086_v40 = vpop.f32.mrf.mxu1  ;;  %v4030_v35 = vor.u32 %v3328_v39, %v2835_v59  ;;  %v3356_v61 = vld [vmem:[#allocation4 + $0x114] sm:$0xf0]  ;;  %v4036_v26 = vor.u32 %v3392_v17, %v3091_v10  ;;  %v3350_v59 = vld [vmem:[#allocation4 + $0xec] sm:$0xf] }
 0x139   :  { %4504 = vst [vmem:[#allocation72_spill] sm:$0xff] %v4026_v12  ;;  %v1087_v53 = vadd.f32 %v1086_v40, %v1073_v56  ;;  %v2933_v39 = vld [vmem:[#allocation4 + $0xf8] sm:$0xf0]  ;;  %v3414_v56 = vld [vmem:[#allocation4 + $0x2ec] sm:$0xf]  ;;  %v4042_v40 = vor.u32 %v3324_v29, %v2819_v9 }
 0x13a   :  { %4505 = vst [vmem:[#allocation73_spill] sm:$0xff] %v4030_v35  ;;  %v3189_v10 = vld [vmem:[#allocation4 + $0x2f8] sm:$0xf0]  ;;  %v3446_v17 = vld [vmem:[#allocation4 + $0x3ec] sm:$0xf]  ;;  %v4052_v8 = vor.u32 %v3350_v59, %v2933_v39 }
 0x13b   :  { %1969 = vmatpush.bf16.msra.mxu0 %v4018_v23  ;;  %1982 = vmatpush.bf16.msra.mxu1 %v4020_v60  ;;  %4506 = vst [vmem:[#allocation74_spill] sm:$0xff] %v4032_v45  ;;  %v3388_v23 = vld [vmem:[#allocation4 + $0x214] sm:$0xf0]  ;;  %v3317_v22 = vld [vmem:[#allocation4 + $0x3f8] sm:$0xf0] }
 0x13c   :  { %1995 = vmatpush.bf16.msra.mxu2 %v4024_v42  ;;  %2008 = vmatpush.bf16.msra.mxu3 %v4026_v12  ;;  %4507 = vst [vmem:[#allocation75_spill] sm:$0xff] %v4036_v26  ;;  %v3420_v60 = vld [vmem:[#allocation4 + $0x314] sm:$0xf0]  ;;  %v4044_v12 = vor.u32 %v3356_v61, %v2947_v28  ;;  %v4048_v27 = vor.u32 %v3388_v23, %v3075_v16  ;;  %v1112_v9 = vpop.f32.mrf.mxu3  ;;  %v3346_v29 = vld [vmem:[#allocation4 + $0xcc] sm:$0xf] }
 0x13d   :  { %4508 = vst [vmem:[#allocation76_spill] sm:$0xff] %v4038_v52  ;;  %v4050_v42 = vor.u32 %v3420_v60, %v3203_v13  ;;  %v2917_v61 = vld [vmem:[#allocation4 + $0xd8] sm:$0xf0]  ;;  %v4056_v28 = vor.u32 %v3414_v56, %v3189_v10  ;;  %v4058_v44 = vor.u32 %v3446_v17, %v3317_v22  ;;  %v3410_v23 = vld [vmem:[#allocation4 + $0x2cc] sm:$0xf] }
 0x13e   :  { %4509 = vst [vmem:[#allocation77_spill] sm:$0xff] %v4052_v8  ;;  %v3045_v16 = vld [vmem:[#allocation4 + $0x1d8] sm:$0xf0]  ;;  %v3442_v60 = vld [vmem:[#allocation4 + $0x3cc] sm:$0xf] }
 0x13f   :  { %1970 = vmatpush.bf16.msra.mxu0 %v4030_v35  ;;  %1983 = vmatpush.bf16.msra.mxu1 %v4032_v45  ;;  %v4054_v35 = vor.u32 %v3382_v11, %v3061_v43  ;;  %v1099_v45 = vpop.f32.mrf.mxu2  ;;  %4511 = vst [vmem:[#allocation79_spill] sm:$0xff] %v4056_v28  ;;  %v3173_v13 = vld [vmem:[#allocation4 + $0x2d8] sm:$0xf0]  ;;  %v3406_v10 = vld [vmem:[#allocation4 + $0x2ac] sm:$0xf] }
 0x140   :  { %1996 = vmatpush.bf16.msra.mxu2 %v4036_v26  ;;  %2009 = vmatpush.bf16.msra.mxu3 %v4038_v52  ;;  %4512 = vst [vmem:[#allocation80_spill] sm:$0xff] %v4058_v44  ;;  %v1100_v34 = vadd.f32 %v1099_v45, %v1087_v53  ;;  %v1075_v26 = vpop.f32.mrf.mxu0  ;;  %v1088_v33 = vpop.f32.mrf.mxu1  ;;  %v3378_v52 = vld [vmem:[#allocation4 + $0x1cc] sm:$0xf]  ;;  %v3301_v59 = vld [vmem:[#allocation4 + $0x3d8] sm:$0xf0]  ;;  %v4074_v11 = vor.u32 %v3410_v23, %v3173_v13 }
 0x141   :  { %4510 = vst [vmem:[#allocation78_spill] sm:$0xff] %v4054_v35  ;;  %v4068_v33 = vor.u32 %v3346_v29, %v2917_v61  ;;  %v4070_v45 = vor.u32 %v3378_v52, %v3045_v16  ;;  %v3342_v53 = vld [vmem:[#allocation4 + $0xac] sm:$0xf]  ;;  %v2901_v26 = vld [vmem:[#allocation4 + $0xb8] sm:$0xf0]  ;;  %v4076_v43 = vor.u32 %v3442_v60, %v3301_v59 }
 0x142   :  { %v4064_v39 = vadd.f32 %v1112_v9, %v1100_v34  ;;  %4515 = vst [vmem:[#allocation83_spill] sm:$0xff] %v4074_v11  ;;  %v3374_v34 = vld [vmem:[#allocation4 + $0x1ac] sm:$0xf]  ;;  %v3029_v56 = vld [vmem:[#allocation4 + $0x1b8] sm:$0xf0]  ;;  %v4084_v9 = vor.u32 %v3342_v53, %v2901_v26 }
 0x143   :  { %1971 = vmatpush.bf16.msra.mxu0 %v4042_v40  ;;  %1984 = vmatpush.bf16.msra.mxu1 %v4044_v12  ;;  %4513 = vst [vmem:[#allocation81_spill] sm:$0xff] %v4068_v33  ;;  %v3157_v17 = vld [vmem:[#allocation4 + $0x2b8] sm:$0xf0]  ;;  %v3438_v52 = vld [vmem:[#allocation4 + $0x3ac] sm:$0xf]  ;;  %v4086_v29 = vor.u32 %v3374_v34, %v3029_v56 }
 0x144   :  { %1997 = vmatpush.bf16.msra.mxu2 %v4048_v27  ;;  %2010 = vmatpush.bf16.msra.mxu3 %v4050_v42  ;;  %4514 = vst [vmem:[#allocation82_spill] sm:$0xff] %v4070_v45  ;;  %v3285_v22 = vld [vmem:[#allocation4 + $0x3b8] sm:$0xf0]  ;;  %v1114_v16 = vpop.f32.mrf.mxu3  ;;  %v3338_v23 = vld [vmem:[#allocation4 + $0x8c] sm:$0xf]  ;;  %v4090_v60 = vor.u32 %v3406_v10, %v3157_v17 }
 0x145   :  { %4516 = vst [vmem:[#allocation84_spill] sm:$0xff] %v4076_v43  ;;  %v2885_v13 = vld [vmem:[#allocation4 + $0x98] sm:$0xf0]  ;;  %v4092_v59 = vor.u32 %v3438_v52, %v3285_v22  ;;  %v3434_v53 = vld [vmem:[#allocation4 + $0x38c] sm:$0xf] }
 0x146   :  { %1972 = vmatmul.bf16.vlgmr.msra.gmra.mxu0 %v3734_v48  ;;  %1985 = vmatmul.bf16.vlgmr.msra.gmra.mxu1 %v3736_v49  ;;  %4517 = vst [vmem:[#allocation85_spill] sm:$0xff] %v4084_v9  ;;  %v3269_v26 = vld [vmem:[#allocation4 + $0x398] sm:$0xf0]  ;;  %v4096_v16 = vor.u32 %v3338_v23, %v2885_v13  ;;  %v3334_v10 = vld [vmem:[#allocation4 + $0x6c] sm:$0xf] }
 0x147   :  { %2016 = vmatpush.bf16.msrb.mxu0 %v4052_v8  ;;  %2029 = vmatpush.bf16.msrb.mxu1 %v4054_v35  ;;  %4518 = vst [vmem:[#allocation86_spill] sm:$0xff] %v4086_v29  ;;  %v1101_v61 = vpop.f32.mrf.mxu2  ;;  %v2869_v17 = vld [vmem:[#allocation4 + $0x78] sm:$0xf0]  ;;  %v4104_v22 = vor.u32 %v3434_v53, %v3269_v26  ;;  %v3330_v23 = vld [vmem:[#allocation4 + $0x4c] sm:$0xf] }
 0x148   :  { %2042 = vmatpush.bf16.msrb.mxu2 %v4056_v28  ;;  %2055 = vmatpush.bf16.msrb.mxu3 %v4058_v44  ;;  %4519 = vst [vmem:[#allocation87_spill] sm:$0xff] %v4090_v60  ;;  %v3370_v44 = vld [vmem:[#allocation4 + $0x18c] sm:$0xf]  ;;  %v1125_v34 = vpop.f32.mrf.mxu0  ;;  %v1138_v56 = vpop.f32.mrf.mxu1  ;;  %v2997_v35 = vld [vmem:[#allocation4 + $0x178] sm:$0xf0] }
 0x149   :  { %1998 = vmatmul.bf16.vlgmr.msra.gmra.mxu2 %v3738_v50  ;;  %2011 = vmatmul.bf16.vlgmr.msra.gmra.mxu3 %v3740_v51  ;;  %4520 = vst [vmem:[#allocation88_spill] sm:$0xff] %v4092_v59  ;;  %v3402_v28 = vld [vmem:[#allocation4 + $0x28c] sm:$0xf]  ;;  %v1139_v61 = vadd.f32 %v1138_v56, %v1125_v34  ;;  %v3125_v8 = vld [vmem:[#allocation4 + $0x278] sm:$0xf0] }
 0x14a   :  { %4521 = vst [vmem:[#allocation89_spill] sm:$0xff] %v4096_v16  ;;  %v3253_v34 = vld [vmem:[#allocation4 + $0x378] sm:$0xf0]  ;;  %v3362_v53 = vld [vmem:[#allocation4 + $0x14c] sm:$0xf] }
 0x14b   :  { %2017 = vmatpush.bf16.msrb.mxu0 %v4068_v33  ;;  %2030 = vmatpush.bf16.msrb.mxu1 %v4070_v45  ;;  %v3013_v33 = vld [vmem:[#allocation4 + $0x198] sm:$0xf0]  ;;  %4524 = vst [vmem:[#allocation92_spill] sm:$0xff] %v4104_v22  ;;  %v3394_v56 = vld [vmem:[#allocation4 + $0x24c] sm:$0xf] }
 0x14c   :  { %2043 = vmatpush.bf16.msrb.mxu2 %v4074_v11  ;;  %2056 = vmatpush.bf16.msrb.mxu3 %v4076_v43  ;;  %v3141_v45 = vld [vmem:[#allocation4 + $0x298] sm:$0xf0]  ;;  %v4098_v43 = vor.u32 %v3370_v44, %v3013_v33  ;;  %v3366_v11 = vld [vmem:[#allocation4 + $0x16c] sm:$0xf]  ;;  %v4108_v44 = vor.u32 %v3334_v10, %v2869_v17 }
 0x14d   :  { %v4102_v52 = vor.u32 %v3402_v28, %v3141_v45  ;;  %v4110_v33 = vor.u32 %v3366_v11, %v2997_v35  ;;  %v2853_v13 = vld [vmem:[#allocation4 + $0x58] sm:$0xf0]  ;;  %v3426_v10 = vld [vmem:[#allocation4 + $0x34c] sm:$0xf] }
 0x14e   :  { %4522 = vst [vmem:[#allocation90_spill] sm:$0xff] %v4098_v43  ;;  %v2981_v26 = vld [vmem:[#allocation4 + $0x158] sm:$0xf0] }
 0x14f   :  { %2018 = vmatpush.bf16.msrb.mxu0 %v4084_v9  ;;  %2031 = vmatpush.bf16.msrb.mxu1 %v4086_v29  ;;  %4523 = vst [vmem:[#allocation91_spill] sm:$0xff] %v4102_v52  ;;  %v3398_v9 = vld [vmem:[#allocation4 + $0x26c] sm:$0xf]  ;;  %v3237_v17 = vld [vmem:[#allocation4 + $0x358] sm:$0xf0] }
 0x150   :  { %2044 = vmatpush.bf16.msrb.mxu2 %v4090_v60  ;;  %2057 = vmatpush.bf16.msrb.mxu3 %v4092_v59  ;;  %v3430_v29 = vld [vmem:[#allocation4 + $0x36c] sm:$0xf]  ;;  %4525 = vst [vmem:[#allocation93_spill] sm:$0xff] %v4110_v33  ;;  %v4114_v28 = vor.u32 %v3398_v9, %v3125_v8  ;;  %v1164_v59 = vpop.f32.mrf.mxu3  ;;  %v1127_v11 = vpop.f32.mrf.mxu0  ;;  %v4122_v8 = vor.u32 %v3362_v53, %v2981_v26 }
 0x151   :  { %v4116_v45 = vor.u32 %v3430_v29, %v3253_v34  ;;  %v1140_v60 = vpop.f32.mrf.mxu1  ;;  %v3326_v9 = vld [vmem:[#allocation4 + $0x2c] sm:$0xf]  ;;  %v2837_v29 = vld [vmem:[#allocation4 + $0x38] sm:$0xf0] }
 0x152   :  { %4526 = vst [vmem:[#allocation94_spill] sm:$0xff] %v4114_v28  ;;  %v3358_v60 = vld [vmem:[#allocation4 + $0x12c] sm:$0xf]  ;;  %v4134_v53 = vor.u32 %v3326_v9, %v2837_v29  ;;  %v3205_v29 = vld [vmem:[#allocation4 + $0x318] sm:$0xf0] }
 0x153   :  { %2019 = vmatpush.bf16.msrb.mxu0 %v4096_v16  ;;  %2032 = vmatpush.bf16.msrb.mxu1 %v4098_v43  ;;  %4527 = vst [vmem:[#allocation95_spill] sm:$0xff] %v4116_v45  ;;  %v1151_v16 = vpop.f32.mrf.mxu2  ;;  %v3109_v43 = vld [vmem:[#allocation4 + $0x258] sm:$0xf0]  ;;  %v3390_v11 = vld [vmem:[#allocation4 + $0x22c] sm:$0xf] }
 0x154   :  { %2045 = vmatpush.bf16.msrb.mxu2 %v4102_v52  ;;  %2058 = vmatpush.bf16.msrb.mxu3 %v4104_v22  ;;  %v1152_v35 = vadd.f32 %v1151_v16, %v1139_v61  ;;  %v4120_v22 = vor.u32 %v3330_v23, %v2853_v13  ;;  %4529 = vst [vmem:[#allocation97_spill] sm:$0xff] %v4122_v8  ;;  %v2965_v16 = vld [vmem:[#allocation4 + $0x138] sm:$0xf0]  ;;  %v3422_v23 = vld [vmem:[#allocation4 + $0x32c] sm:$0xf] }
 0x155   :  { %v4128_v52 = vor.u32 %v3394_v56, %v3109_v43  ;;  %v4130_v61 = vor.u32 %v3426_v10, %v3237_v17  ;;  %v3221_v13 = vld [vmem:[#allocation4 + $0x338] sm:$0xf0]  ;;  %v4136_v26 = vor.u32 %v3358_v60, %v2965_v16  ;;  %v3354_v10 = vld [vmem:[#allocation4 + $0x10c] sm:$0xf] }
 0x156   :  { %4528 = vst [vmem:[#allocation96_spill] sm:$0xff] %v4120_v22  ;;  %v4126_v34 = vadd.f32 %v1164_v59, %v1152_v35  ;;  %v3322_v59 = vld [vmem:[#allocation4 + $0xc] sm:$0xf]  ;;  %v2821_v35 = vld [vmem:[#allocation4 + $0x18] sm:$0xf0]  ;;  %v4142_v56 = vor.u32 %v3422_v23, %v3221_v13 }
 0x157   :  { %2020 = vmatpush.bf16.msrb.mxu0 %v4108_v44  ;;  %2033 = vmatpush.bf16.msrb.mxu1 %v4110_v33  ;;  %v3093_v33 = vld [vmem:[#allocation4 + $0x238] sm:$0xf0]  ;;  %v3418_v9 = vld [vmem:[#allocation4 + $0x30c] sm:$0xf]  ;;  %v4146_v60 = vor.u32 %v3322_v59, %v2821_v35  ;;  %v4546_v35 = vld [vmem:[#allocation25_spill] sm:$0xff] }
 0x158   :  { %2046 = vmatpush.bf16.msrb.mxu2 %v4114_v28  ;;  %2059 = vmatpush.bf16.msrb.mxu3 %v4116_v45  ;;  %v4140_v43 = vor.u32 %v3390_v11, %v3093_v33  ;;  %v2949_v17 = vld [vmem:[#allocation4 + $0x118] sm:$0xf0]  ;;  %v3386_v45 = vld [vmem:[#allocation4 + $0x20c] sm:$0xf]  ;;  %v1166_v28 = vpop.f32.mrf.mxu3  ;;  %v4154_v11 = vor.u32 %v3418_v9, %v3205_v29  ;;  %v4549_v29 = vld [vmem:[#allocation27_spill] sm:$0xff] }
 0x159   :  { %v4148_v16 = vor.u32 %v3354_v10, %v2949_v17  ;;  %v4542_v28 = vld [vmem:[#allocation21_spill] sm:$0xff]  ;;  %v4545_v59 = vld [vmem:[#allocation24_spill] sm:$0xff]  ;;  %v4547_v10 = vld [vmem:[#allocation66_spill] sm:$0xff] }
 0x15a   :  { %v4548_v9 = vld [vmem:[#allocation26_spill] sm:$0xff] }
 0x15b   :  { %2021 = vmatpush.bf16.msrb.mxu0 %v4120_v22  ;;  %2034 = vmatpush.bf16.msrb.mxu1 %v4122_v8  ;;  %v1153_v22 = vpop.f32.mrf.mxu2  ;;  %v3077_v8 = vld [vmem:[#allocation4 + $0x218] sm:$0xf0] }
 0x15c   :  { %2047 = vmatpush.bf16.msrb.mxu2 %v4128_v52  ;;  %2060 = vmatpush.bf16.msrb.mxu3 %v4130_v61  ;;  %v4152_v33 = vor.u32 %v3386_v45, %v3077_v8  ;;  %v4541_v22 = vld [vmem:[#allocation20_spill] sm:$0xff]  ;;  %v4543_v45 = vld [vmem:[#allocation22_spill] sm:$0xff]  ;;  %v4544_v8 = vld [vmem:[#allocation23_spill] sm:$0xff] }
 0x15f   :  { %2022 = vmatpush.bf16.msrb.mxu0 %v4134_v53  ;;  %2035 = vmatpush.bf16.msrb.mxu1 %v4136_v26 }
 0x160   :  { %2048 = vmatpush.bf16.msrb.mxu2 %v4140_v43  ;;  %2061 = vmatpush.bf16.msrb.mxu3 %v4142_v56 }
 0x163   :  { %2023 = vmatpush.bf16.msrb.mxu0 %v4146_v60  ;;  %2036 = vmatpush.bf16.msrb.mxu1 %v4148_v16 }
 0x164   :  { %2049 = vmatpush.bf16.msrb.mxu2 %v4152_v33  ;;  %2062 = vmatpush.bf16.msrb.mxu3 %v4154_v11 }
 0x166   :  { %2024 = vmatmul.bf16.vlgmr.msrb.gmra.mxu0 %v3734_v48  ;;  %2037 = vmatmul.bf16.vlgmr.msrb.gmra.mxu1 %v3736_v49 }
 0x167   :  { %2068 = vmatpush.bf16.msra.mxu0 %v3754_v20  ;;  %2081 = vmatpush.bf16.msra.mxu1 %v3756_v21  ;;  %v1177_v20 = vpop.f32.mrf.mxu0  ;;  %v1190_v21 = vpop.f32.mrf.mxu1 }
 0x168   :  { %2094 = vmatpush.bf16.msra.mxu2 %v3758_v24  ;;  %2107 = vmatpush.bf16.msra.mxu3 %v3760_v25  ;;  %v1191_v48 = vadd.f32 %v1190_v21, %v1177_v20  ;;  %v4550_v21 = vld [vmem:[#allocation28_spill] sm:$0xff] }
 0x169   :  { %2050 = vmatmul.bf16.vlgmr.msrb.gmra.mxu2 %v3738_v50  ;;  %2063 = vmatmul.bf16.vlgmr.msrb.gmra.mxu3 %v3740_v51 }
 0x16b   :  { %2069 = vmatpush.bf16.msra.mxu0 %v3764_v36  ;;  %2082 = vmatpush.bf16.msra.mxu1 %v3766_v0 }
 0x16c   :  { %2095 = vmatpush.bf16.msra.mxu2 %v3770_v1  ;;  %2108 = vmatpush.bf16.msra.mxu3 %v3772_v41  ;;  %v1203_v49 = vpop.f32.mrf.mxu2  ;;  %v1216_v50 = vpop.f32.mrf.mxu3  ;;  %v90_v41 = vunpack.c.l.bf16 %v3724_v37 }
 0x16d   :  { %v1204_v51 = vadd.f32 %v1203_v49, %v1191_v48  ;;  %v4551_v48 = vld [vmem:[#allocation29_spill] sm:$0xff]  ;;  %v4552_v49 = vld [vmem:[#allocation30_spill] sm:$0xff] }
 0x16f   :  { %2070 = vmatpush.bf16.msra.mxu0 %v3780_v46  ;;  %2083 = vmatpush.bf16.msra.mxu1 %v3782_v47  ;;  %v1179_v24 = vpop.f32.mrf.mxu0  ;;  %v1192_v25 = vpop.f32.mrf.mxu1  ;;  %v4184_v36 = vadd.f32 %v1216_v50, %v1204_v51  ;;  %v91_v46 = vunpack.c.h.bf16 %v3724_v37  ;;  %v92_v47 = vunpack.c.l.bf16 %v3728_v38  ;;  %v4553_v50 = vld [vmem:[#allocation31_spill] sm:$0xff] }
 0x170   :  { %2096 = vmatpush.bf16.msra.mxu2 %v3786_v54  ;;  %2109 = vmatpush.bf16.msra.mxu3 %v3788_v55  ;;  %v93_v54 = vunpack.c.h.bf16 %v3728_v38  ;;  %v94_v55 = vsub.f32 %v3711_v32, %v90_v41  ;;  %v4535_v38 = vld [vmem:[#allocation14_spill] sm:$0xff]  ;;  %v4554_v41 = vld [vmem:[#allocation32_spill] sm:$0xff] }
 0x173   :  { %2071 = vmatpush.bf16.msra.mxu0 %v3792_v62  ;;  %2084 = vmatpush.bf16.msra.mxu1 %v3794_v63  ;;  %v4530_v62 = vld [vmem:[#allocation9_spill] sm:$0xff] }
 0x174   :  { %2097 = vmatpush.bf16.msra.mxu2 %v3798_v6  ;;  %2110 = vmatpush.bf16.msra.mxu3 %v3800_v7  ;;  %v1205_v0 = vpop.f32.mrf.mxu2  ;;  %v1218_v1 = vpop.f32.mrf.mxu3  ;;  %v95_v63 = vsub.f32 %v4530_v62, %v91_v46  ;;  %v4531_v6 = vld [vmem:[#allocation10_spill] sm:$0xff]  ;;  %v4555_v46 = vld [vmem:[#allocation33_spill] sm:$0xff] }
 0x175   :  { %v96_v7 = vsub.f32 %v4531_v6, %v92_v47  ;;  %v4556_v47 = vld [vmem:[#allocation34_spill] sm:$0xff] }
 0x177   :  { %2072 = vmatpush.bf16.msra.mxu0 %v3804_v14  ;;  %2085 = vmatpush.bf16.msra.mxu1 %v3806_v15  ;;  %v4532_v14 = vld [vmem:[#allocation11_spill] sm:$0xff]  ;;  %v4533_v15 = vld [vmem:[#allocation12_spill] sm:$0xff] }
 0x178   :  { %2098 = vmatpush.bf16.msra.mxu2 %v3810_v18  ;;  %2111 = vmatpush.bf16.msra.mxu3 %v3812_v19  ;;  %v97_v37 = vsub.f32 %v4532_v14, %v93_v54  ;;  %v4534_v18 = vld [vmem:[#allocation13_spill] sm:$0xff]  ;;  %v4536_v19 = vld [vmem:[#allocation15_spill] sm:$0xff] }
 0x179   :  { %v4557_v54 = vld [vmem:[#allocation35_spill] sm:$0xff] }
 0x17b   :  { %2073 = vmatpush.bf16.msra.mxu0 %v3816_v30  ;;  %2086 = vmatpush.bf16.msra.mxu1 %v3818_v31  ;;  %v4537_v30 = vld [vmem:[#allocation16_spill] sm:$0xff]  ;;  %v4538_v31 = vld [vmem:[#allocation17_spill] sm:$0xff] }
 0x17c   :  { %2099 = vmatpush.bf16.msra.mxu2 %v3822_v2  ;;  %2112 = vmatpush.bf16.msra.mxu3 %v3824_v3  ;;  %v4208_v2 = vpack.c.bf16 %v94_v55, %v94_v55  ;;  %v4210_v3 = vpack.c.bf16 %v95_v63, %v95_v63  ;;  %v4558_v63 = vld [vmem:[#allocation36_spill] sm:$0xff] }
 0x17f   :  { %2074 = vmatpush.bf16.msra.mxu0 %v3828_v57  ;;  %2087 = vmatpush.bf16.msra.mxu1 %v3830_v58  ;;  %v4539_v57 = vld [vmem:[#allocation18_spill] sm:$0xff]  ;;  %v4540_v58 = vld [vmem:[#allocation19_spill] sm:$0xff] }
 0x180   :  { %2100 = vmatpush.bf16.msra.mxu2 %v3834_v4  ;;  %2113 = vmatpush.bf16.msra.mxu3 %v3836_v5  ;;  %v4214_v4 = vpack.c.bf16 %v96_v7, %v96_v7  ;;  %v4216_v5 = vpack.c.bf16 %v97_v37, %v97_v37  ;;  %v4559_v7 = vld [vmem:[#allocation37_spill] sm:$0xff]  ;;  %v4560_v37 = vld [vmem:[#allocation38_spill] sm:$0xff] }
 0x183   :  { %2075 = vmatpush.bf16.msra.mxu0 %v4533_v15  ;;  %2088 = vmatpush.bf16.msra.mxu1 %v4534_v18  ;;  %v1869_v23 = vpop.f32.mrf.mxu0  ;;  %v1882_v13 = vpop.f32.mrf.mxu1  ;;  %v4561_v15 = vld [vmem:[#allocation39_spill] sm:$0xff] }
 0x184   :  { %2101 = vmatpush.bf16.msra.mxu2 %v4535_v38  ;;  %2114 = vmatpush.bf16.msra.mxu3 %v4536_v19  ;;  %v1870_v17 = vadd.f32 %v1869_v23, %v4547_v10  ;;  %v4562_v19 = vld [vmem:[#allocation40_spill] sm:$0xff]  ;;  %v4571_v23 = vld [vmem:[#allocation49_spill] sm:$0xff] }
 0x185   :  { %v4575_v10 = vld [vmem:[#allocation53_spill] sm:$0xff] }
 0x186   :  { %2076 = vmatmul.bf16.vlgmr.msra.gmra.mxu0 %v4208_v2  ;;  %2089 = vmatmul.bf16.vlgmr.msra.gmra.mxu1 %v4210_v3  ;;  %v1883_v20 = vadd.f32 %v1882_v13, %v1870_v17  ;;  %v4572_v13 = vld [vmem:[#allocation50_spill] sm:$0xff] }
 0x187   :  { %2120 = vmatpush.bf16.msrb.mxu0 %v4537_v30  ;;  %2133 = vmatpush.bf16.msrb.mxu1 %v4538_v31  ;;  %v4563_v30 = vld [vmem:[#allocation41_spill] sm:$0xff]  ;;  %v4564_v31 = vld [vmem:[#allocation42_spill] sm:$0xff] }
 0x188   :  { %2146 = vmatpush.bf16.msrb.mxu2 %v4539_v57  ;;  %2159 = vmatpush.bf16.msrb.mxu3 %v4540_v58  ;;  %v4565_v57 = vld [vmem:[#allocation43_spill] sm:$0xff]  ;;  %v4566_v58 = vld [vmem:[#allocation44_spill] sm:$0xff]  ;;  %v4576_v17 = vld [vmem:[#allocation54_spill] sm:$0xff] }
 0x189   :  { %2102 = vmatmul.bf16.vlgmr.msra.gmra.mxu2 %v4214_v4  ;;  %2115 = vmatmul.bf16.vlgmr.msra.gmra.mxu3 %v4216_v5 }
 0x18b   :  { %2121 = vmatpush.bf16.msrb.mxu0 %v4541_v22  ;;  %2134 = vmatpush.bf16.msrb.mxu1 %v4542_v28  ;;  %v1871_v0 = vpop.f32.mrf.mxu0  ;;  %v1884_v1 = vpop.f32.mrf.mxu1  ;;  %v4567_v22 = vld [vmem:[#allocation45_spill] sm:$0xff]  ;;  %v4568_v28 = vld [vmem:[#allocation46_spill] sm:$0xff] }
 0x18c   :  { %2147 = vmatpush.bf16.msrb.mxu2 %v4543_v45  ;;  %2160 = vmatpush.bf16.msrb.mxu3 %v4544_v8  ;;  %v1895_v51 = vpop.f32.mrf.mxu2  ;;  %v1908_v24 = vpop.f32.mrf.mxu3  ;;  %v4569_v45 = vld [vmem:[#allocation47_spill] sm:$0xff]  ;;  %v4570_v8 = vld [vmem:[#allocation48_spill] sm:$0xff]  ;;  %v4583_v0 = vld [vmem:[#allocation61_spill] sm:$0xff] }
 0x18d   :  { %v1896_v25 = vadd.f32 %v1895_v51, %v1883_v20  ;;  %v4581_v51 = vld [vmem:[#allocation59_spill] sm:$0xff]  ;;  %v4584_v1 = vld [vmem:[#allocation62_spill] sm:$0xff] }
 0x18f   :  { %2122 = vmatpush.bf16.msrb.mxu0 %v4545_v59  ;;  %2135 = vmatpush.bf16.msrb.mxu1 %v4546_v35  ;;  %v4239_v55 = vadd.f32 %v1908_v24, %v1896_v25  ;;  %v4573_v59 = vld [vmem:[#allocation51_spill] sm:$0xff]  ;;  %v4574_v35 = vld [vmem:[#allocation52_spill] sm:$0xff] }
 0x190   :  { %2148 = vmatpush.bf16.msrb.mxu2 %v4548_v9  ;;  %2161 = vmatpush.bf16.msrb.mxu3 %v4549_v29  ;;  %v4577_v9 = vld [vmem:[#allocation55_spill] sm:$0xff]  ;;  %v4582_v25 = vld [vmem:[#allocation60_spill] sm:$0xff] }
 0x193   :  { %2123 = vmatpush.bf16.msrb.mxu0 %v4550_v21  ;;  %2136 = vmatpush.bf16.msrb.mxu1 %v4551_v48  ;;  %v4578_v21 = vld [vmem:[#allocation56_spill] sm:$0xff]  ;;  %v4579_v48 = vld [vmem:[#allocation57_spill] sm:$0xff] }
 0x194   :  { %2149 = vmatpush.bf16.msrb.mxu2 %v4552_v49  ;;  %2162 = vmatpush.bf16.msrb.mxu3 %v4553_v50  ;;  %v1897_v18 = vpop.f32.mrf.mxu2  ;;  %v1910_v38 = vpop.f32.mrf.mxu3  ;;  %v4580_v50 = vld [vmem:[#allocation58_spill] sm:$0xff] }
 0x195   :  { %v4589_v18 = vld [vmem:[#allocation68_spill] sm:$0xff] }
 0x197   :  { %2124 = vmatpush.bf16.msrb.mxu0 %v4554_v41  ;;  %2137 = vmatpush.bf16.msrb.mxu1 %v4555_v46  ;;  %v4585_v41 = vld [vmem:[#allocation63_spill] sm:$0xff] }
 0x198   :  { %2150 = vmatpush.bf16.msrb.mxu2 %v4556_v47  ;;  %2163 = vmatpush.bf16.msrb.mxu3 %v4557_v54 }
 0x19b   :  { %2125 = vmatpush.bf16.msrb.mxu0 %v4558_v63  ;;  %2138 = vmatpush.bf16.msrb.mxu1 %v4559_v7 }
 0x19c   :  { %2151 = vmatpush.bf16.msrb.mxu2 %v4560_v37  ;;  %2164 = vmatpush.bf16.msrb.mxu3 %v4561_v15  ;;  %v4586_v37 = vld [vmem:[#allocation64_spill] sm:$0xff]  ;;  %v4588_v15 = vld [vmem:[#allocation67_spill] sm:$0xff] }
 0x19f   :  { %2126 = vmatpush.bf16.msrb.mxu0 %v4562_v19  ;;  %2139 = vmatpush.bf16.msrb.mxu1 %v4563_v30  ;;  %v4590_v19 = vld [vmem:[#allocation69_spill] sm:$0xff]  ;;  %v4591_v30 = vld [vmem:[#allocation70_spill] sm:$0xff] }
 0x1a0   :  { %2152 = vmatpush.bf16.msrb.mxu2 %v4564_v31  ;;  %2165 = vmatpush.bf16.msrb.mxu3 %v4565_v57  ;;  %v4592_v31 = vld [vmem:[#allocation71_spill] sm:$0xff]  ;;  %v4593_v57 = vld [vmem:[#allocation72_spill] sm:$0xff] }
 0x1a3   :  { %2127 = vmatpush.bf16.msrb.mxu0 %v4566_v58  ;;  %2140 = vmatpush.bf16.msrb.mxu1 %v4567_v22  ;;  %v1921_v29 = vpop.f32.mrf.mxu0  ;;  %v1934_v20 = vpop.f32.mrf.mxu1 }
 0x1a4   :  { %2153 = vmatpush.bf16.msrb.mxu2 %v4568_v28  ;;  %2166 = vmatpush.bf16.msrb.mxu3 %v4569_v45  ;;  %v1922_v49 = vadd.f32 %v1921_v29, %v4064_v39  ;;  %v4587_v39 = vld [vmem:[#allocation65_spill] sm:$0xff]  ;;  %v4595_v45 = vld [vmem:[#allocation74_spill] sm:$0xff] }
 0x1a5   :  { %v4594_v28 = vld [vmem:[#allocation73_spill] sm:$0xff] }
 0x1a6   :  { %2128 = vmatmul.bf16.vlgmr.msrb.gmra.mxu0 %v4208_v2  ;;  %2141 = vmatmul.bf16.vlgmr.msrb.gmra.mxu1 %v4210_v3  ;;  %v1935_v24 = vadd.f32 %v1934_v20, %v1922_v49  ;;  %v4606_v29 = vld [vmem:[#allocation85_spill] sm:$0xff]  ;;  %v4607_v20 = vld [vmem:[#allocation86_spill] sm:$0xff]  ;;  %v4609_v49 = vld [vmem:[#allocation88_spill] sm:$0xff] }
 0x1a7   :  { %2172 = vmatpush.bf16.msra.mxu0 %v4570_v8  ;;  %2185 = vmatpush.bf16.msra.mxu1 %v4571_v23  ;;  %v4596_v8 = vld [vmem:[#allocation75_spill] sm:$0xff]  ;;  %v4597_v23 = vld [vmem:[#allocation76_spill] sm:$0xff] }
 0x1a8   :  { %2198 = vmatpush.bf16.msra.mxu2 %v4572_v13  ;;  %2211 = vmatpush.bf16.msra.mxu3 %v4573_v59  ;;  %v4598_v13 = vld [vmem:[#allocation77_spill] sm:$0xff]  ;;  %v4599_v59 = vld [vmem:[#allocation78_spill] sm:$0xff] }
 0x1a9   :  { %2154 = vmatmul.bf16.vlgmr.msrb.gmra.mxu2 %v4214_v4  ;;  %2167 = vmatmul.bf16.vlgmr.msrb.gmra.mxu3 %v4216_v5 }
 0x1ab   :  { %2173 = vmatpush.bf16.msra.mxu0 %v4574_v35  ;;  %2186 = vmatpush.bf16.msra.mxu1 %v4575_v10  ;;  %v1923_v63 = vpop.f32.mrf.mxu0  ;;  %v1936_v7 = vpop.f32.mrf.mxu1  ;;  %v4600_v35 = vld [vmem:[#allocation79_spill] sm:$0xff]  ;;  %v4601_v10 = vld [vmem:[#allocation80_spill] sm:$0xff] }
 0x1ac   :  { %2199 = vmatpush.bf16.msra.mxu2 %v4576_v17  ;;  %2212 = vmatpush.bf16.msra.mxu3 %v4577_v9  ;;  %v1947_v46 = vpop.f32.mrf.mxu2  ;;  %v1960_v47 = vpop.f32.mrf.mxu3  ;;  %v4615_v63 = vld [vmem:[#allocation94_spill] sm:$0xff]  ;;  %v4616_v7 = vld [vmem:[#allocation95_spill] sm:$0xff] }
 0x1ad   :  { %v1948_v54 = vadd.f32 %v1947_v46, %v1935_v24  ;;  %v4611_v24 = vld [vmem:[#allocation90_spill] sm:$0xff] }
 0x1af   :  { %2174 = vmatpush.bf16.msra.mxu0 %v4578_v21  ;;  %2187 = vmatpush.bf16.msra.mxu1 %v4579_v48  ;;  %v4278_v38 = vadd.f32 %v1960_v47, %v1948_v54  ;;  %v4608_v48 = vld [vmem:[#allocation87_spill] sm:$0xff] }
 0x1b0   :  { %2200 = vmatpush.bf16.msra.mxu2 %v4580_v50  ;;  %2213 = vmatpush.bf16.msra.mxu3 %v4581_v51  ;;  %v4610_v51 = vld [vmem:[#allocation89_spill] sm:$0xff] }
 0x1b3   :  { %2175 = vmatpush.bf16.msra.mxu0 %v4582_v25  ;;  %2188 = vmatpush.bf16.msra.mxu1 %v4583_v0  ;;  %v4612_v25 = vld [vmem:[#allocation91_spill] sm:$0xff]  ;;  %v4613_v0 = vld [vmem:[#allocation92_spill] sm:$0xff] }
 0x1b4   :  { %2201 = vmatpush.bf16.msra.mxu2 %v4584_v1  ;;  %2214 = vmatpush.bf16.msra.mxu3 %v4585_v41  ;;  %v1949_v58 = vpop.f32.mrf.mxu2  ;;  %v1962_v22 = vpop.f32.mrf.mxu3 }
 0x1b7   :  { %2176 = vmatpush.bf16.msra.mxu0 %v4586_v37  ;;  %2189 = vmatpush.bf16.msra.mxu1 %v4587_v39  ;;  %v4617_v39 = vld [vmem:[#allocation96_spill] sm:$0xff] }
 0x1b8   :  { %2202 = vmatpush.bf16.msra.mxu2 %v4588_v15  ;;  %2215 = vmatpush.bf16.msra.mxu3 %v4589_v18  ;;  %v4618_v15 = vld [vmem:[#allocation97_spill] sm:$0xff] }
 0x1bb   :  { %2177 = vmatpush.bf16.msra.mxu0 %v4590_v19  ;;  %2190 = vmatpush.bf16.msra.mxu1 %v4591_v30 }
 0x1bc   :  { %2203 = vmatpush.bf16.msra.mxu2 %v4592_v31  ;;  %2216 = vmatpush.bf16.msra.mxu3 %v4593_v57 }
 0x1bf   :  { %2178 = vmatpush.bf16.msra.mxu0 %v4594_v28  ;;  %2191 = vmatpush.bf16.msra.mxu1 %v4595_v45 }
 0x1c0   :  { %2204 = vmatpush.bf16.msra.mxu2 %v4596_v8  ;;  %2217 = vmatpush.bf16.msra.mxu3 %v4597_v23 }
 0x1c3   :  { %2179 = vmatpush.bf16.msra.mxu0 %v4042_v40  ;;  %2192 = vmatpush.bf16.msra.mxu1 %v4044_v12  ;;  %v4602_v12 = vld [vmem:[#allocation81_spill] sm:$0xff]  ;;  %v4603_v40 = vld [vmem:[#allocation82_spill] sm:$0xff]  ;;  %v1973_v17 = vpop.f32.mrf.mxu0  ;;  %v1986_v9 = vpop.f32.mrf.mxu1 }
 0x1c4   :  { %2205 = vmatpush.bf16.msra.mxu2 %v4048_v27  ;;  %2218 = vmatpush.bf16.msra.mxu3 %v4050_v42  ;;  %v4604_v42 = vld [vmem:[#allocation83_spill] sm:$0xff]  ;;  %v4605_v27 = vld [vmem:[#allocation84_spill] sm:$0xff]  ;;  %v1974_v21 = vadd.f32 %v1973_v17, %v4126_v34  ;;  %v4614_v34 = vld [vmem:[#allocation93_spill] sm:$0xff] }
 0x1c6   :  { %2180 = vmatmul.bf16.vlgmr.msra.gmra.mxu0 %v4208_v2  ;;  %2193 = vmatmul.bf16.vlgmr.msra.gmra.mxu1 %v4210_v3  ;;  %v1987_v50 = vadd.f32 %v1986_v9, %v1974_v21 }
 0x1c7   :  { %2224 = vmatpush.bf16.msrb.mxu0 %v4598_v13  ;;  %2237 = vmatpush.bf16.msrb.mxu1 %v4599_v59 }
 0x1c8   :  { %2250 = vmatpush.bf16.msrb.mxu2 %v4600_v35  ;;  %2263 = vmatpush.bf16.msrb.mxu3 %v4601_v10 }
 0x1c9   :  { %2206 = vmatmul.bf16.vlgmr.msra.gmra.mxu2 %v4214_v4  ;;  %2219 = vmatmul.bf16.vlgmr.msra.gmra.mxu3 %v4216_v5 }
 0x1cb   :  { %2225 = vmatpush.bf16.msrb.mxu0 %v4602_v12  ;;  %2238 = vmatpush.bf16.msrb.mxu1 %v4603_v40  ;;  %v1975_v47 = vpop.f32.mrf.mxu0  ;;  %v1988_v54 = vpop.f32.mrf.mxu1 }
 0x1cc   :  { %2251 = vmatpush.bf16.msrb.mxu2 %v4604_v42  ;;  %2264 = vmatpush.bf16.msrb.mxu3 %v4605_v27  ;;  %v1999_v1 = vpop.f32.mrf.mxu2  ;;  %v2012_v41 = vpop.f32.mrf.mxu3 }
 0x1cd   :  { %v2000_v46 = vadd.f32 %v1999_v1, %v1987_v50 }
 0x1cf   :  { %2226 = vmatpush.bf16.msrb.mxu0 %v4606_v29  ;;  %2239 = vmatpush.bf16.msrb.mxu1 %v4607_v20  ;;  %v4317_v37 = vadd.f32 %v2012_v41, %v2000_v46 }
 0x1d0   :  { %2252 = vmatpush.bf16.msrb.mxu2 %v4608_v48  ;;  %2265 = vmatpush.bf16.msrb.mxu3 %v4609_v49 }
 0x1d3   :  { %2227 = vmatpush.bf16.msrb.mxu0 %v4610_v51  ;;  %2240 = vmatpush.bf16.msrb.mxu1 %v4611_v24 }
 0x1d4   :  { %2253 = vmatpush.bf16.msrb.mxu2 %v4612_v25  ;;  %2266 = vmatpush.bf16.msrb.mxu3 %v4613_v0  ;;  %v2001_v18 = vpop.f32.mrf.mxu2  ;;  %v2014_v19 = vpop.f32.mrf.mxu3 }
 0x1d7   :  { %2228 = vmatpush.bf16.msrb.mxu0 %v4108_v44  ;;  %2241 = vmatpush.bf16.msrb.mxu1 %v4614_v34 }
 0x1d8   :  { %2254 = vmatpush.bf16.msrb.mxu2 %v4615_v63  ;;  %2267 = vmatpush.bf16.msrb.mxu3 %v4616_v7 }
 0x1db   :  { %2229 = vmatpush.bf16.msrb.mxu0 %v4617_v39  ;;  %2242 = vmatpush.bf16.msrb.mxu1 %v4618_v15 }
 0x1dc   :  { %2255 = vmatpush.bf16.msrb.mxu2 %v4128_v52  ;;  %2268 = vmatpush.bf16.msrb.mxu3 %v4130_v61 }
 0x1df   :  { %2230 = vmatpush.bf16.msrb.mxu0 %v4134_v53  ;;  %2243 = vmatpush.bf16.msrb.mxu1 %v4136_v26 }
 0x1e0   :  { %2256 = vmatpush.bf16.msrb.mxu2 %v4140_v43  ;;  %2269 = vmatpush.bf16.msrb.mxu3 %v4142_v56 }
 0x1e3   :  { %2231 = vmatpush.bf16.msrb.mxu0 %v4146_v60  ;;  %2244 = vmatpush.bf16.msrb.mxu1 %v4148_v16  ;;  %v2025_v52 = vpop.f32.mrf.mxu0  ;;  %v2038_v44 = vpop.f32.mrf.mxu1 }
 0x1e4   :  { %2257 = vmatpush.bf16.msrb.mxu2 %v4152_v33  ;;  %2270 = vmatpush.bf16.msrb.mxu3 %v4154_v11  ;;  %v2026_v61 = vadd.f32 %v2025_v52, %v4184_v36 }
 0x1e6   :  { %2232 = vmatmul.bf16.vlgmr.msrb.gmra.mxu0 %v4208_v2  ;;  %2245 = vmatmul.bf16.vlgmr.msrb.gmra.mxu1 %v4210_v3  ;;  %v2039_v53 = vadd.f32 %v2038_v44, %v2026_v61 }
 0x1e7   :  { %2258 = vmatmul.bf16.vlgmr.msrb.gmra.mxu2 %v4214_v4  ;;  %2271 = vmatmul.bf16.vlgmr.msrb.gmra.mxu3 %v4216_v5 }
 0x1eb   :  { %v2027_v60 = vpop.f32.mrf.mxu0  ;;  %v2040_v16 = vpop.f32.mrf.mxu1 }
 0x1ec   :  { %v2051_v26 = vpop.f32.mrf.mxu2  ;;  %v2064_v43 = vpop.f32.mrf.mxu3 }
 0x1ed   :  { %v2052_v56 = vadd.f32 %v2051_v26, %v2039_v53 }
 0x1ef   :  { %v2065_v33 = vadd.f32 %v2064_v43, %v2052_v56 }
 0x1f4   :  { %v2053_v11 = vpop.f32.mrf.mxu2  ;;  %v2066_v30 = vpop.f32.mrf.mxu3 }
 0x203   :  { %v2077_v2 = vpop.f32.mrf.mxu0  ;;  %v2090_v31 = vpop.f32.mrf.mxu1 }
 0x204   :  { %v2091_v3 = vadd.f32 %v2090_v31, %v2077_v2 }
 0x20b   :  { %v2079_v5 = vpop.f32.mrf.mxu0  ;;  %v2092_v22 = vpop.f32.mrf.mxu1 }
 0x20c   :  { %v2103_v57 = vpop.f32.mrf.mxu2  ;;  %v2116_v4 = vpop.f32.mrf.mxu3 }
 0x20d   :  { %v2104_v58 = vadd.f32 %v2103_v57, %v2091_v3 }
 0x20f   :  { %v2117_v28 = vadd.f32 %v2116_v4, %v2104_v58 }
 0x211   :  { %v2276_v36 = vadd.f32 %v2117_v28, %v4239_v55 }
 0x213   :  { %v2280_v9 = vmul.f32 %v2276_v36, %v3711_v32 }
 0x214   :  { %v2105_v45 = vpop.f32.mrf.mxu2  ;;  %v2118_v8 = vpop.f32.mrf.mxu3 }
 0x223   :  { %v2129_v23 = vpop.f32.mrf.mxu0  ;;  %v2142_v13 = vpop.f32.mrf.mxu1 }
 0x224   :  { %v2143_v59 = vadd.f32 %v2142_v13, %v2129_v23 }
 0x22b   :  { %v2131_v40 = vpop.f32.mrf.mxu0  ;;  %v2144_v42 = vpop.f32.mrf.mxu1 }
 0x22c   :  { %v2155_v35 = vpop.f32.mrf.mxu2  ;;  %v2168_v10 = vpop.f32.mrf.mxu3 }
 0x22d   :  { %v2156_v12 = vadd.f32 %v2155_v35, %v2143_v59 }
 0x22f   :  { %v2169_v27 = vadd.f32 %v2168_v10, %v2156_v12 }
 0x231   :  { %v2277_v17 = vadd.f32 %v2169_v27, %v4278_v38 }
 0x233   :  { %v2281_v29 = vmul.f32 %v2277_v17, %v4530_v62 }
 0x234   :  { %v2157_v20 = vpop.f32.mrf.mxu2  ;;  %v2170_v21 = vpop.f32.mrf.mxu3 }
 0x235   :  { %v2284_v55 = vadd.f32 %v2281_v29, %v2280_v9 }
 0x243   :  { %v2181_v48 = vpop.f32.mrf.mxu0  ;;  %v2194_v49 = vpop.f32.mrf.mxu1 }
 0x244   :  { %v2195_v50 = vadd.f32 %v2194_v49, %v2181_v48 }
 0x24b   :  { %v2183_v0 = vpop.f32.mrf.mxu0  ;;  %v2196_v1 = vpop.f32.mrf.mxu1 }
 0x24c   :  { %v2207_v51 = vpop.f32.mrf.mxu2  ;;  %v2220_v24 = vpop.f32.mrf.mxu3 }
 0x24d   :  { %v2208_v25 = vadd.f32 %v2207_v51, %v2195_v50 }
 0x24f   :  { %v2221_v41 = vadd.f32 %v2220_v24, %v2208_v25 }
 0x251   :  { %v2278_v46 = vadd.f32 %v2221_v41, %v4317_v37 }
 0x253   :  { %v2282_v38 = vmul.f32 %v2278_v46, %v4531_v6 }
 0x254   :  { %v2209_v47 = vpop.f32.mrf.mxu2  ;;  %v2222_v32 = vpop.f32.mrf.mxu3 }
 0x255   :  { %v2285_v54 = vadd.f32 %v2284_v55, %v2282_v38 }
 0x263   :  { %v2233_v62 = vpop.f32.mrf.mxu0  ;;  %v2246_v34 = vpop.f32.mrf.mxu1 }
 0x264   :  { %v2247_v63 = vadd.f32 %v2246_v34, %v2233_v62 }
 0x26a   :  { %v2259_v7 = vpop.f32.mrf.mxu2  ;;  %v2272_v39 = vpop.f32.mrf.mxu3 }
 0x26b   :  { %v2260_v15 = vadd.f32 %v2259_v7, %v2247_v63  ;;  %v2235_v18 = vpop.f32.mrf.mxu0  ;;  %v2248_v19 = vpop.f32.mrf.mxu1 }
 0x26d   :  { %v2273_v52 = vadd.f32 %v2272_v39, %v2260_v15 }
 0x26f   :  { %v2279_v44 = vadd.f32 %v2273_v52, %v2065_v33 }
 0x271   :  { %v2283_v61 = vmul.f32 %v2279_v44, %v4532_v14 }
 0x272   :  { %v2261_v53 = vpop.f32.mrf.mxu2  ;;  %v2274_v26 = vpop.f32.mrf.mxu3 }
 0x273   :  { %v2286_v37 = vadd.f32 %v2285_v54, %v2283_v61 }
 0x275   :  { %2287 = vadd.xlane.f32.xlu0 %v2286_v37 }
 0x2e8   :  { %v2288_v6 = vpop.xlane.xlu0 %2287 }
 0x2e9   :  { %2290 = vst.msk [vmem:[%s4349_s3] sm:$0xff] %vm2289_vm4, %v2288_v6 }
 0x2ea   :  { %2295 = vsyncpa [#allocation3], 1 }
 0x2eb   :  { %2296 = vsyncpa [#allocation5], 1 }

</bundles_post_ra>
